<compile_context>
chip_gen: v5e
topology: v5e:2x2
jax: 0.10.0
libtpu: 0.0.40
codegen_flags: <defaults>
</compile_context>

<pallas_src>
import functools

import numpy as np
import jax
import jax.numpy as jnp
from jax.experimental import pallas as pl
from jax.experimental.pallas import tpu as pltpu


def _round_up(x, m):
    return ((x + m - 1) // m) * m


def prcn_kernel(xt_ref, w_ref, b_ref, o_ref, *, idx_sets, avg_size):
    # xt_ref: (1, K*K, Cin, hw)   tap-shifted input windows, lane-dense spatial
    # w_ref:  (K*K, Cin, OC)      grouped-conv weights, tap-major
    # b_ref:  (Cin, OC)           bias
    # o_ref:  (1, outChannels, hw)
    n_taps, Cin = xt_ref.shape[1], xt_ref.shape[2]
    out_c, hw = o_ref.shape[1], o_ref.shape[2]
    OC = b_ref.shape[1]

    # ---- grouped conv (1 input channel -> OC outputs per group) ------------
    # Static tap loop of vreg-wide FMAs on the VPU; bias folded into the init.
    b = b_ref[...]                                        # (Cin, OC)
    acc = jnp.broadcast_to(b[:, :, None], (Cin, OC, hw)).astype(jnp.float32)
    for t in range(n_taps):
        xt_t = xt_ref[0, t]                               # (Cin, hw) lane-dense
        w_t = w_ref[t]                                    # (Cin, OC)
        acc = acc + xt_t[:, None, :] * w_t[:, :, None]
    conv = acc.reshape(Cin * OC, hw)                      # (Ctot, hw)
    # torch out-channel ordering: row index == c_in * OC + oc

    # ---- FusedMultiPool (max over G static channels per set) fused with ----
    # ---- AvgPool over the set dimension (incremental accumulate) -----------
    inv = jnp.float32(1.0 / avg_size)
    rows = []
    for oc in range(out_c):
        oc_sum = None
        for a in range(avg_size):
            members = idx_sets[oc * avg_size + a]         # static Python ints
            g0 = members[0]
            m = conv[g0:g0 + 1]                           # (1, hw)
            for g in members[1:]:
                m = jnp.maximum(m, conv[g:g + 1])
            oc_sum = m if oc_sum is None else oc_sum + m
        rows.append(oc_sum * inv)
    # Single full-width, lane-dense store.
    o_ref[0] = jnp.concatenate(rows, axis=0)              # (out_c, hw)


def prcn_forward(x, w_taps, b, idx_sets, *, padding, out_channels, ksize,
                 avg_size, hw_tile_cap=2048):
    """x: (N, Cin, H, W); w_taps: (K*K, Cin, OC); b: (Cin, OC);
    idx_sets: tuple of tuples of Python ints, shape (S, G)."""
    N, Cin, H, W = x.shape
    OC = w_taps.shape[2]
    K = ksize
    Hp, Wp = H + 2 * padding, W + 2 * padding
    Ho, Wo = Hp - K + 1, Wp - K + 1
    HW = Ho * Wo

    # --- build lane-dense tap windows (im2col-lite) in the wrapper ----------
    xp = jnp.pad(x, ((0, 0), (0, 0), (padding, padding), (padding, padding)))
    taps = []
    for ki in range(K):
        for kj in range(K):
            taps.append(xp[:, :, ki:ki + Ho, kj:kj + Wo].reshape(N, Cin, HW))
    x_taps = jnp.stack(taps, axis=1)                      # (N, K*K, Cin, HW)

    # --- pad the flattened spatial axis and pick a lane-dense tile ----------
    # Tile is a multiple of 128; footprint per step is roughly
    # (K*K*Cin + 2*Cin*OC + outChannels) * hw_tile * 4B (double-buffered x/out),
    # sized well below the v7x 32 MiB scoped / 64 MiB physical VMEM budget.
    hw_tile = min(_round_up(HW, 128), hw_tile_cap)
    HWp = _round_up(HW, hw_tile)
    n_tiles = HWp // hw_tile
    if HWp != HW:
        x_taps = jnp.pad(x_taps, ((0, 0), (0, 0), (0, 0), (0, HWp - HW)))

    out = pl.pallas_call(
        functools.partial(prcn_kernel, idx_sets=idx_sets, avg_size=avg_size),
        out_shape=jax.ShapeDtypeStruct((N, out_channels, HWp), jnp.float32),
        grid=(N, n_tiles),
        in_specs=[
            pl.BlockSpec((1, K * K, Cin, hw_tile), lambda n, t: (n, 0, 0, t)),
            pl.BlockSpec((K * K, Cin, OC), lambda n, t: (0, 0, 0)),
            pl.BlockSpec((Cin, OC), lambda n, t: (0, 0)),
        ],
        out_specs=pl.BlockSpec((1, out_channels, hw_tile),
                               lambda n, t: (n, 0, t)),
        compiler_params=pltpu.CompilerParams(
            dimension_semantics=("parallel", "parallel")),
    )(x_taps, w_taps, b)

    return out[:, :, :HW].reshape(N, out_channels, Ho, Wo)


if __name__ == "__main__":
    # Small, shape-consistent config.
    nChannels, outChannels, G, exp_ = 4, 8, 4, 2
    kernel_size, padding = 3, 1        # stride arg of PRCNv2 is never used by its conv
    N, H, W = 2, 16, 16

    Ctot = nChannels * outChannels                         # 32
    S = (outChannels * nChannels * exp_) // G              # 16 random channel sets
    avg_size = (nChannels * exp_) // G                     # 2

    # Deterministic parameters / inputs.
    key = jax.random.PRNGKey(0)
    kx, kw, kb = jax.random.split(key, 3)
    x = jax.random.normal(kx, (N, nChannels, H, W), jnp.float32)
    w = jax.random.normal(kw, (nChannels, outChannels, kernel_size, kernel_size),
                          jnp.float32) * 0.1
    b = jax.random.normal(kb, (nChannels, outChannels), jnp.float32) * 0.1

    # Deterministic random channel-index sets (== create_channel_idx_sets).
    rng = np.random.RandomState(0)
    random_list = rng.permutation(Ctot * exp_)
    idx_sets_np = np.mod(random_list.reshape(S, G), Ctot).astype(np.int32)
    # Static (host-side) index sets -> plain Python ints baked into the kernel.
    idx_sets = tuple(tuple(int(v) for v in row) for row in idx_sets_np)

    # Tap-major weight layout for the kernel: (K*K, Cin, OC).
    w_taps = jnp.transpose(w, (2, 3, 0, 1)).reshape(kernel_size * kernel_size,
                                                    nChannels, outChannels)

    out = prcn_forward(x, w_taps, b, idx_sets, padding=padding,
                       out_channels=outChannels, ksize=kernel_size,
                       avg_size=avg_size)
    out = jax.block_until_ready(out)
    assert out.shape == (N, outChannels, H, W), out.shape

    # Pure-JAX reference for correctness.
    wt = w.reshape(Ctot, 1, kernel_size, kernel_size)      # torch OIHW grouped layout
    ref = jax.lax.conv_general_dilated(
        x, wt, window_strides=(1, 1),
        padding=[(padding, padding), (padding, padding)],
        dimension_numbers=("NCHW", "OIHW", "NCHW"),
        feature_group_count=nChannels)
    ref = ref + b.reshape(1, Ctot, 1, 1)
    gathered = ref[:, jnp.asarray(idx_sets_np), :, :]      # (N, S, G, H, W)
    pooled = gathered.max(axis=2)                          # (N, S, H, W)
    ref_out = pooled.reshape(N, outChannels, avg_size, H, W).mean(axis=2)

    np.testing.assert_allclose(np.asarray(out), np.asarray(ref_out),
                               rtol=1e-4, atol=1e-4)
    print("KERNEL_OK")
</pallas_src>

<mosaic_0001>
module attributes {stable_mosaic.version = 11 : i64} {
  func.func @prcn_kernel(%arg0: i32, %arg1: i32, %arg2: memref<1x9x4x256xf32, #tpu.memory_space<vmem>>, %arg3: memref<9x4x8xf32, #tpu.memory_space<vmem>>, %arg4: memref<4x8xf32, #tpu.memory_space<vmem>>, %arg5: memref<1x8x256xf32, #tpu.memory_space<vmem>>) attributes {dimension_semantics = [#tpu.dimension_semantics<parallel>, #tpu.dimension_semantics<parallel>], iteration_bounds = array<i64: 2, 1>, scalar_prefetch = 0 : i64, scratch_operands = 0 : i64, tpu.core_type = #tpu.core_type<tc>, window_params = [{transform_indices = @transform_0, window_bounds = array<i64: 1, 9, 4, 256>}, {pipeline_mode = #tpu.pipeline_mode<synchronous>, transform_indices = @transform_1, window_bounds = array<i64: 9, 4, 8>}, {pipeline_mode = #tpu.pipeline_mode<synchronous>, transform_indices = @transform_2, window_bounds = array<i64: 4, 8>}, {transform_indices = @transform_3, window_bounds = array<i64: 1, 8, 256>}]} {
    %c0 = arith.constant 0 : index
    %c0_0 = arith.constant 0 : index
    %0 = vector.load %arg4[%c0, %c0_0] : memref<4x8xf32, #tpu.memory_space<vmem>>, vector<4x8xf32>
    %1 = vector.shape_cast %0 : vector<4x8xf32> to vector<4x8x1xf32>
    %2 = vector.shape_cast %1 : vector<4x8x1xf32> to vector<4x8x1xf32>
    %3 = vector.broadcast %2 : vector<4x8x1xf32> to vector<4x8x256xf32>
    %c0_1 = arith.constant 0 : index
    %c0_2 = arith.constant 0 : index
    %c0_3 = arith.constant 0 : index
    %c0_4 = arith.constant 0 : index
    %4 = vector.load %arg2[%c0_1, %c0_2, %c0_3, %c0_4] : memref<1x9x4x256xf32, #tpu.memory_space<vmem>>, vector<1x1x4x256xf32>
    %5 = vector.shape_cast %4 : vector<1x1x4x256xf32> to vector<4x256xf32>
    %c0_5 = arith.constant 0 : index
    %c0_6 = arith.constant 0 : index
    %c0_7 = arith.constant 0 : index
    %6 = vector.load %arg3[%c0_5, %c0_6, %c0_7] : memref<9x4x8xf32, #tpu.memory_space<vmem>>, vector<1x4x8xf32>
    %7 = vector.shape_cast %6 : vector<1x4x8xf32> to vector<4x8xf32>
    %8 = vector.shape_cast %5 : vector<4x256xf32> to vector<4x1x256xf32>
    %9 = vector.shape_cast %7 : vector<4x8xf32> to vector<4x8x1xf32>
    %10 = vector.broadcast %8 : vector<4x1x256xf32> to vector<4x8x256xf32>
    %11 = vector.broadcast %9 : vector<4x8x1xf32> to vector<4x8x256xf32>
    %12 = arith.mulf %10, %11 : vector<4x8x256xf32>
    %13 = arith.addf %3, %12 : vector<4x8x256xf32>
    %c0_8 = arith.constant 0 : index
    %c1 = arith.constant 1 : index
    %c0_9 = arith.constant 0 : index
    %c0_10 = arith.constant 0 : index
    %14 = vector.load %arg2[%c0_8, %c1, %c0_9, %c0_10] : memref<1x9x4x256xf32, #tpu.memory_space<vmem>>, vector<1x1x4x256xf32>
    %15 = vector.shape_cast %14 : vector<1x1x4x256xf32> to vector<4x256xf32>
    %c1_11 = arith.constant 1 : index
    %c0_12 = arith.constant 0 : index
    %c0_13 = arith.constant 0 : index
    %16 = vector.load %arg3[%c1_11, %c0_12, %c0_13] : memref<9x4x8xf32, #tpu.memory_space<vmem>>, vector<1x4x8xf32>
    %17 = vector.shape_cast %16 : vector<1x4x8xf32> to vector<4x8xf32>
    %18 = vector.shape_cast %15 : vector<4x256xf32> to vector<4x1x256xf32>
    %19 = vector.shape_cast %17 : vector<4x8xf32> to vector<4x8x1xf32>
    %20 = vector.broadcast %18 : vector<4x1x256xf32> to vector<4x8x256xf32>
    %21 = vector.broadcast %19 : vector<4x8x1xf32> to vector<4x8x256xf32>
    %22 = arith.mulf %20, %21 : vector<4x8x256xf32>
    %23 = arith.addf %13, %22 : vector<4x8x256xf32>
    %c0_14 = arith.constant 0 : index
    %c2 = arith.constant 2 : index
    %c0_15 = arith.constant 0 : index
    %c0_16 = arith.constant 0 : index
    %24 = vector.load %arg2[%c0_14, %c2, %c0_15, %c0_16] : memref<1x9x4x256xf32, #tpu.memory_space<vmem>>, vector<1x1x4x256xf32>
    %25 = vector.shape_cast %24 : vector<1x1x4x256xf32> to vector<4x256xf32>
    %c2_17 = arith.constant 2 : index
    %c0_18 = arith.constant 0 : index
    %c0_19 = arith.constant 0 : index
    %26 = vector.load %arg3[%c2_17, %c0_18, %c0_19] : memref<9x4x8xf32, #tpu.memory_space<vmem>>, vector<1x4x8xf32>
    %27 = vector.shape_cast %26 : vector<1x4x8xf32> to vector<4x8xf32>
    %28 = vector.shape_cast %25 : vector<4x256xf32> to vector<4x1x256xf32>
    %29 = vector.shape_cast %27 : vector<4x8xf32> to vector<4x8x1xf32>
    %30 = vector.broadcast %28 : vector<4x1x256xf32> to vector<4x8x256xf32>
    %31 = vector.broadcast %29 : vector<4x8x1xf32> to vector<4x8x256xf32>
    %32 = arith.mulf %30, %31 : vector<4x8x256xf32>
    %33 = arith.addf %23, %32 : vector<4x8x256xf32>
    %c0_20 = arith.constant 0 : index
    %c3 = arith.constant 3 : index
    %c0_21 = arith.constant 0 : index
    %c0_22 = arith.constant 0 : index
    %34 = vector.load %arg2[%c0_20, %c3, %c0_21, %c0_22] : memref<1x9x4x256xf32, #tpu.memory_space<vmem>>, vector<1x1x4x256xf32>
    %35 = vector.shape_cast %34 : vector<1x1x4x256xf32> to vector<4x256xf32>
    %c3_23 = arith.constant 3 : index
    %c0_24 = arith.constant 0 : index
    %c0_25 = arith.constant 0 : index
    %36 = vector.load %arg3[%c3_23, %c0_24, %c0_25] : memref<9x4x8xf32, #tpu.memory_space<vmem>>, vector<1x4x8xf32>
    %37 = vector.shape_cast %36 : vector<1x4x8xf32> to vector<4x8xf32>
    %38 = vector.shape_cast %35 : vector<4x256xf32> to vector<4x1x256xf32>
    %39 = vector.shape_cast %37 : vector<4x8xf32> to vector<4x8x1xf32>
    %40 = vector.broadcast %38 : vector<4x1x256xf32> to vector<4x8x256xf32>
    %41 = vector.broadcast %39 : vector<4x8x1xf32> to vector<4x8x256xf32>
    %42 = arith.mulf %40, %41 : vector<4x8x256xf32>
    %43 = arith.addf %33, %42 : vector<4x8x256xf32>
    %c0_26 = arith.constant 0 : index
    %c4 = arith.constant 4 : index
    %c0_27 = arith.constant 0 : index
    %c0_28 = arith.constant 0 : index
    %44 = vector.load %arg2[%c0_26, %c4, %c0_27, %c0_28] : memref<1x9x4x256xf32, #tpu.memory_space<vmem>>, vector<1x1x4x256xf32>
    %45 = vector.shape_cast %44 : vector<1x1x4x256xf32> to vector<4x256xf32>
    %c4_29 = arith.constant 4 : index
    %c0_30 = arith.constant 0 : index
    %c0_31 = arith.constant 0 : index
    %46 = vector.load %arg3[%c4_29, %c0_30, %c0_31] : memref<9x4x8xf32, #tpu.memory_space<vmem>>, vector<1x4x8xf32>
    %47 = vector.shape_cast %46 : vector<1x4x8xf32> to vector<4x8xf32>
    %48 = vector.shape_cast %45 : vector<4x256xf32> to vector<4x1x256xf32>
    %49 = vector.shape_cast %47 : vector<4x8xf32> to vector<4x8x1xf32>
    %50 = vector.broadcast %48 : vector<4x1x256xf32> to vector<4x8x256xf32>
    %51 = vector.broadcast %49 : vector<4x8x1xf32> to vector<4x8x256xf32>
    %52 = arith.mulf %50, %51 : vector<4x8x256xf32>
    %53 = arith.addf %43, %52 : vector<4x8x256xf32>
    %c0_32 = arith.constant 0 : index
    %c5 = arith.constant 5 : index
    %c0_33 = arith.constant 0 : index
    %c0_34 = arith.constant 0 : index
    %54 = vector.load %arg2[%c0_32, %c5, %c0_33, %c0_34] : memref<1x9x4x256xf32, #tpu.memory_space<vmem>>, vector<1x1x4x256xf32>
    %55 = vector.shape_cast %54 : vector<1x1x4x256xf32> to vector<4x256xf32>
    %c5_35 = arith.constant 5 : index
    %c0_36 = arith.constant 0 : index
    %c0_37 = arith.constant 0 : index
    %56 = vector.load %arg3[%c5_35, %c0_36, %c0_37] : memref<9x4x8xf32, #tpu.memory_space<vmem>>, vector<1x4x8xf32>
    %57 = vector.shape_cast %56 : vector<1x4x8xf32> to vector<4x8xf32>
    %58 = vector.shape_cast %55 : vector<4x256xf32> to vector<4x1x256xf32>
    %59 = vector.shape_cast %57 : vector<4x8xf32> to vector<4x8x1xf32>
    %60 = vector.broadcast %58 : vector<4x1x256xf32> to vector<4x8x256xf32>
    %61 = vector.broadcast %59 : vector<4x8x1xf32> to vector<4x8x256xf32>
    %62 = arith.mulf %60, %61 : vector<4x8x256xf32>
    %63 = arith.addf %53, %62 : vector<4x8x256xf32>
    %c0_38 = arith.constant 0 : index
    %c6 = arith.constant 6 : index
    %c0_39 = arith.constant 0 : index
    %c0_40 = arith.constant 0 : index
    %64 = vector.load %arg2[%c0_38, %c6, %c0_39, %c0_40] : memref<1x9x4x256xf32, #tpu.memory_space<vmem>>, vector<1x1x4x256xf32>
    %65 = vector.shape_cast %64 : vector<1x1x4x256xf32> to vector<4x256xf32>
    %c6_41 = arith.constant 6 : index
    %c0_42 = arith.constant 0 : index
    %c0_43 = arith.constant 0 : index
    %66 = vector.load %arg3[%c6_41, %c0_42, %c0_43] : memref<9x4x8xf32, #tpu.memory_space<vmem>>, vector<1x4x8xf32>
    %67 = vector.shape_cast %66 : vector<1x4x8xf32> to vector<4x8xf32>
    %68 = vector.shape_cast %65 : vector<4x256xf32> to vector<4x1x256xf32>
    %69 = vector.shape_cast %67 : vector<4x8xf32> to vector<4x8x1xf32>
    %70 = vector.broadcast %68 : vector<4x1x256xf32> to vector<4x8x256xf32>
    %71 = vector.broadcast %69 : vector<4x8x1xf32> to vector<4x8x256xf32>
    %72 = arith.mulf %70, %71 : vector<4x8x256xf32>
    %73 = arith.addf %63, %72 : vector<4x8x256xf32>
    %c0_44 = arith.constant 0 : index
    %c7 = arith.constant 7 : index
    %c0_45 = arith.constant 0 : index
    %c0_46 = arith.constant 0 : index
    %74 = vector.load %arg2[%c0_44, %c7, %c0_45, %c0_46] : memref<1x9x4x256xf32, #tpu.memory_space<vmem>>, vector<1x1x4x256xf32>
    %75 = vector.shape_cast %74 : vector<1x1x4x256xf32> to vector<4x256xf32>
    %c7_47 = arith.constant 7 : index
    %c0_48 = arith.constant 0 : index
    %c0_49 = arith.constant 0 : index
    %76 = vector.load %arg3[%c7_47, %c0_48, %c0_49] : memref<9x4x8xf32, #tpu.memory_space<vmem>>, vector<1x4x8xf32>
    %77 = vector.shape_cast %76 : vector<1x4x8xf32> to vector<4x8xf32>
    %78 = vector.shape_cast %75 : vector<4x256xf32> to vector<4x1x256xf32>
    %79 = vector.shape_cast %77 : vector<4x8xf32> to vector<4x8x1xf32>
    %80 = vector.broadcast %78 : vector<4x1x256xf32> to vector<4x8x256xf32>
    %81 = vector.broadcast %79 : vector<4x8x1xf32> to vector<4x8x256xf32>
    %82 = arith.mulf %80, %81 : vector<4x8x256xf32>
    %83 = arith.addf %73, %82 : vector<4x8x256xf32>
    %c0_50 = arith.constant 0 : index
    %c8 = arith.constant 8 : index
    %c0_51 = arith.constant 0 : index
    %c0_52 = arith.constant 0 : index
    %84 = vector.load %arg2[%c0_50, %c8, %c0_51, %c0_52] : memref<1x9x4x256xf32, #tpu.memory_space<vmem>>, vector<1x1x4x256xf32>
    %85 = vector.shape_cast %84 : vector<1x1x4x256xf32> to vector<4x256xf32>
    %c8_53 = arith.constant 8 : index
    %c0_54 = arith.constant 0 : index
    %c0_55 = arith.constant 0 : index
    %86 = vector.load %arg3[%c8_53, %c0_54, %c0_55] : memref<9x4x8xf32, #tpu.memory_space<vmem>>, vector<1x4x8xf32>
    %87 = vector.shape_cast %86 : vector<1x4x8xf32> to vector<4x8xf32>
    %88 = vector.shape_cast %85 : vector<4x256xf32> to vector<4x1x256xf32>
    %89 = vector.shape_cast %87 : vector<4x8xf32> to vector<4x8x1xf32>
    %90 = vector.broadcast %88 : vector<4x1x256xf32> to vector<4x8x256xf32>
    %91 = vector.broadcast %89 : vector<4x8x1xf32> to vector<4x8x256xf32>
    %92 = arith.mulf %90, %91 : vector<4x8x256xf32>
    %93 = arith.addf %83, %92 : vector<4x8x256xf32>
    %94 = vector.shape_cast %93 : vector<4x8x256xf32> to vector<32x256xf32>
    %95 = vector.extract_strided_slice %94 {offsets = [13, 0], sizes = [1, 256], strides = [1, 1]} : vector<32x256xf32> to vector<1x256xf32>
    %96 = vector.extract_strided_slice %94 {offsets = [29, 0], sizes = [1, 256], strides = [1, 1]} : vector<32x256xf32> to vector<1x256xf32>
    %97 = arith.maximumf %95, %96 : vector<1x256xf32>
    %98 = vector.extract_strided_slice %94 {offsets = [11, 0], sizes = [1, 256], strides = [1, 1]} : vector<32x256xf32> to vector<1x256xf32>
    %99 = arith.maximumf %97, %98 : vector<1x256xf32>
    %100 = vector.extract_strided_slice %94 {offsets = [29, 0], sizes = [1, 256], strides = [1, 1]} : vector<32x256xf32> to vector<1x256xf32>
    %101 = arith.maximumf %99, %100 : vector<1x256xf32>
    %102 = vector.extract_strided_slice %94 {offsets = [2, 0], sizes = [1, 256], strides = [1, 1]} : vector<32x256xf32> to vector<1x256xf32>
    %103 = vector.extract_strided_slice %94 {offsets = [1, 0], sizes = [1, 256], strides = [1, 1]} : vector<32x256xf32> to vector<1x256xf32>
    %104 = arith.maximumf %102, %103 : vector<1x256xf32>
    %105 = vector.extract_strided_slice %94 {offsets = [31, 0], sizes = [1, 256], strides = [1, 1]} : vector<32x256xf32> to vector<1x256xf32>
    %106 = arith.maximumf %104, %105 : vector<1x256xf32>
    %107 = vector.extract_strided_slice %94 {offsets = [8, 0], sizes = [1, 256], strides = [1, 1]} : vector<32x256xf32> to vector<1x256xf32>
    %108 = arith.maximumf %106, %107 : vector<1x256xf32>
    %109 = arith.addf %101, %108 : vector<1x256xf32>
    %cst = arith.constant 5.000000e-01 : f32
    %110 = vector.broadcast %cst : f32 to vector<1x256xf32>
    %111 = arith.mulf %109, %110 : vector<1x256xf32>
    %112 = vector.extract_strided_slice %94 {offsets = [26, 0], sizes = [1, 256], strides = [1, 1]} : vector<32x256xf32> to vector<1x256xf32>
    %113 = vector.extract_strided_slice %94 {offsets = [30, 0], sizes = [1, 256], strides = [1, 1]} : vector<32x256xf32> to vector<1x256xf32>
    %114 = arith.maximumf %112, %113 : vector<1x256xf32>
    %115 = vector.extract_strided_slice %94 {offsets = [22, 0], sizes = [1, 256], strides = [1, 1]} : vector<32x256xf32> to vector<1x256xf32>
    %116 = arith.maximumf %114, %115 : vector<1x256xf32>
    %117 = vector.extract_strided_slice %94 {offsets = [2, 0], sizes = [1, 256], strides = [1, 1]} : vector<32x256xf32> to vector<1x256xf32>
    %118 = arith.maximumf %116, %117 : vector<1x256xf32>
    %119 = vector.extract_strided_slice %94 {offsets = [11, 0], sizes = [1, 256], strides = [1, 1]} : vector<32x256xf32> to vector<1x256xf32>
    %120 = vector.extract_strided_slice %94 {offsets = [28, 0], sizes = [1, 256], strides = [1, 1]} : vector<32x256xf32> to vector<1x256xf32>
    %121 = arith.maximumf %119, %120 : vector<1x256xf32>
    %122 = vector.extract_strided_slice %94 {offsets = [22, 0], sizes = [1, 256], strides = [1, 1]} : vector<32x256xf32> to vector<1x256xf32>
    %123 = arith.maximumf %121, %122 : vector<1x256xf32>
    %124 = vector.extract_strided_slice %94 {offsets = [4, 0], sizes = [1, 256], strides = [1, 1]} : vector<32x256xf32> to vector<1x256xf32>
    %125 = arith.maximumf %123, %124 : vector<1x256xf32>
    %126 = arith.addf %118, %125 : vector<1x256xf32>
    %cst_56 = arith.constant 5.000000e-01 : f32
    %127 = vector.broadcast %cst_56 : f32 to vector<1x256xf32>
    %128 = arith.mulf %126, %127 : vector<1x256xf32>
    %129 = vector.extract_strided_slice %94 {offsets = [10, 0], sizes = [1, 256], strides = [1, 1]} : vector<32x256xf32> to vector<1x256xf32>
    %130 = vector.extract_strided_slice %94 {offsets = [3, 0], sizes = [1, 256], strides = [1, 1]} : vector<32x256xf32> to vector<1x256xf32>
    %131 = arith.maximumf %129, %130 : vector<1x256xf32>
    %132 = vector.extract_strided_slice %94 {offsets = [20, 0], sizes = [1, 256], strides = [1, 1]} : vector<32x256xf32> to vector<1x256xf32>
    %133 = arith.maximumf %131, %132 : vector<1x256xf32>
    %134 = vector.extract_strided_slice %94 {offsets = [14, 0], sizes = [1, 256], strides = [1, 1]} : vector<32x256xf32> to vector<1x256xf32>
    %135 = arith.maximumf %133, %134 : vector<1x256xf32>
    %136 = vector.extract_strided_slice %94 {offsets = [30, 0], sizes = [1, 256], strides = [1, 1]} : vector<32x256xf32> to vector<1x256xf32>
    %137 = vector.extract_strided_slice %94 {offsets = [7, 0], sizes = [1, 256], strides = [1, 1]} : vector<32x256xf32> to vector<1x256xf32>
    %138 = arith.maximumf %136, %137 : vector<1x256xf32>
    %139 = vector.extract_strided_slice %94 {offsets = [14, 0], sizes = [1, 256], strides = [1, 1]} : vector<32x256xf32> to vector<1x256xf32>
    %140 = arith.maximumf %138, %139 : vector<1x256xf32>
    %141 = vector.extract_strided_slice %94 {offsets = [27, 0], sizes = [1, 256], strides = [1, 1]} : vector<32x256xf32> to vector<1x256xf32>
    %142 = arith.maximumf %140, %141 : vector<1x256xf32>
    %143 = arith.addf %135, %142 : vector<1x256xf32>
    %cst_57 = arith.constant 5.000000e-01 : f32
    %144 = vector.broadcast %cst_57 : f32 to vector<1x256xf32>
    %145 = arith.mulf %143, %144 : vector<1x256xf32>
    %146 = vector.extract_strided_slice %94 {offsets = [31, 0], sizes = [1, 256], strides = [1, 1]} : vector<32x256xf32> to vector<1x256xf32>
    %147 = vector.extract_strided_slice %94 {offsets = [23, 0], sizes = [1, 256], strides = [1, 1]} : vector<32x256xf32> to vector<1x256xf32>
    %148 = arith.maximumf %146, %147 : vector<1x256xf32>
    %149 = vector.extract_strided_slice %94 {offsets = [9, 0], sizes = [1, 256], strides = [1, 1]} : vector<32x256xf32> to vector<1x256xf32>
    %150 = arith.maximumf %148, %149 : vector<1x256xf32>
    %151 = vector.extract_strided_slice %94 {offsets = [10, 0], sizes = [1, 256], strides = [1, 1]} : vector<32x256xf32> to vector<1x256xf32>
    %152 = arith.maximumf %150, %151 : vector<1x256xf32>
    %153 = vector.extract_strided_slice %94 {offsets = [26, 0], sizes = [1, 256], strides = [1, 1]} : vector<32x256xf32> to vector<1x256xf32>
    %154 = vector.extract_strided_slice %94 {offsets = [18, 0], sizes = [1, 256], strides = [1, 1]} : vector<32x256xf32> to vector<1x256xf32>
    %155 = arith.maximumf %153, %154 : vector<1x256xf32>
    %156 = vector.extract_strided_slice %94 {offsets = [28, 0], sizes = [1, 256], strides = [1, 1]} : vector<32x256xf32> to vector<1x256xf32>
    %157 = arith.maximumf %155, %156 : vector<1x256xf32>
    %158 = vector.extract_strided_slice %94 {offsets = [0, 0], sizes = [1, 256], strides = [1, 1]} : vector<32x256xf32> to vector<1x256xf32>
    %159 = arith.maximumf %157, %158 : vector<1x256xf32>
    %160 = arith.addf %152, %159 : vector<1x256xf32>
    %cst_58 = arith.constant 5.000000e-01 : f32
    %161 = vector.broadcast %cst_58 : f32 to vector<1x256xf32>
    %162 = arith.mulf %160, %161 : vector<1x256xf32>
    %163 = vector.extract_strided_slice %94 {offsets = [15, 0], sizes = [1, 256], strides = [1, 1]} : vector<32x256xf32> to vector<1x256xf32>
    %164 = vector.extract_strided_slice %94 {offsets = [5, 0], sizes = [1, 256], strides = [1, 1]} : vector<32x256xf32> to vector<1x256xf32>
    %165 = arith.maximumf %163, %164 : vector<1x256xf32>
    %166 = vector.extract_strided_slice %94 {offsets = [16, 0], sizes = [1, 256], strides = [1, 1]} : vector<32x256xf32> to vector<1x256xf32>
    %167 = arith.maximumf %165, %166 : vector<1x256xf32>
    %168 = vector.extract_strided_slice %94 {offsets = [20, 0], sizes = [1, 256], strides = [1, 1]} : vector<32x256xf32> to vector<1x256xf32>
    %169 = arith.maximumf %167, %168 : vector<1x256xf32>
    %170 = vector.extract_strided_slice %94 {offsets = [24, 0], sizes = [1, 256], strides = [1, 1]} : vector<32x256xf32> to vector<1x256xf32>
    %171 = vector.extract_strided_slice %94 {offsets = [8, 0], sizes = [1, 256], strides = [1, 1]} : vector<32x256xf32> to vector<1x256xf32>
    %172 = arith.maximumf %170, %171 : vector<1x256xf32>
    %173 = vector.extract_strided_slice %94 {offsets = [13, 0], sizes = [1, 256], strides = [1, 1]} : vector<32x256xf32> to vector<1x256xf32>
    %174 = arith.maximumf %172, %173 : vector<1x256xf32>
    %175 = vector.extract_strided_slice %94 {offsets = [25, 0], sizes = [1, 256], strides = [1, 1]} : vector<32x256xf32> to vector<1x256xf32>
    %176 = arith.maximumf %174, %175 : vector<1x256xf32>
    %177 = arith.addf %169, %176 : vector<1x256xf32>
    %cst_59 = arith.constant 5.000000e-01 : f32
    %178 = vector.broadcast %cst_59 : f32 to vector<1x256xf32>
    %179 = arith.mulf %177, %178 : vector<1x256xf32>
    %180 = vector.extract_strided_slice %94 {offsets = [5, 0], sizes = [1, 256], strides = [1, 1]} : vector<32x256xf32> to vector<1x256xf32>
    %181 = vector.extract_strided_slice %94 {offsets = [17, 0], sizes = [1, 256], strides = [1, 1]} : vector<32x256xf32> to vector<1x256xf32>
    %182 = arith.maximumf %180, %181 : vector<1x256xf32>
    %183 = vector.extract_strided_slice %94 {offsets = [16, 0], sizes = [1, 256], strides = [1, 1]} : vector<32x256xf32> to vector<1x256xf32>
    %184 = arith.maximumf %182, %183 : vector<1x256xf32>
    %185 = vector.extract_strided_slice %94 {offsets = [19, 0], sizes = [1, 256], strides = [1, 1]} : vector<32x256xf32> to vector<1x256xf32>
    %186 = arith.maximumf %184, %185 : vector<1x256xf32>
    %187 = vector.extract_strided_slice %94 {offsets = [25, 0], sizes = [1, 256], strides = [1, 1]} : vector<32x256xf32> to vector<1x256xf32>
    %188 = vector.extract_strided_slice %94 {offsets = [6, 0], sizes = [1, 256], strides = [1, 1]} : vector<32x256xf32> to vector<1x256xf32>
    %189 = arith.maximumf %187, %188 : vector<1x256xf32>
    %190 = vector.extract_strided_slice %94 {offsets = [1, 0], sizes = [1, 256], strides = [1, 1]} : vector<32x256xf32> to vector<1x256xf32>
    %191 = arith.maximumf %189, %190 : vector<1x256xf32>
    %192 = vector.extract_strided_slice %94 {offsets = [12, 0], sizes = [1, 256], strides = [1, 1]} : vector<32x256xf32> to vector<1x256xf32>
    %193 = arith.maximumf %191, %192 : vector<1x256xf32>
    %194 = arith.addf %186, %193 : vector<1x256xf32>
    %cst_60 = arith.constant 5.000000e-01 : f32
    %195 = vector.broadcast %cst_60 : f32 to vector<1x256xf32>
    %196 = arith.mulf %194, %195 : vector<1x256xf32>
    %197 = vector.extract_strided_slice %94 {offsets = [17, 0], sizes = [1, 256], strides = [1, 1]} : vector<32x256xf32> to vector<1x256xf32>
    %198 = vector.extract_strided_slice %94 {offsets = [24, 0], sizes = [1, 256], strides = [1, 1]} : vector<32x256xf32> to vector<1x256xf32>
    %199 = arith.maximumf %197, %198 : vector<1x256xf32>
    %200 = vector.extract_strided_slice %94 {offsets = [6, 0], sizes = [1, 256], strides = [1, 1]} : vector<32x256xf32> to vector<1x256xf32>
    %201 = arith.maximumf %199, %200 : vector<1x256xf32>
    %202 = vector.extract_strided_slice %94 {offsets = [23, 0], sizes = [1, 256], strides = [1, 1]} : vector<32x256xf32> to vector<1x256xf32>
    %203 = arith.maximumf %201, %202 : vector<1x256xf32>
    %204 = vector.extract_strided_slice %94 {offsets = [4, 0], sizes = [1, 256], strides = [1, 1]} : vector<32x256xf32> to vector<1x256xf32>
    %205 = vector.extract_strided_slice %94 {offsets = [18, 0], sizes = [1, 256], strides = [1, 1]} : vector<32x256xf32> to vector<1x256xf32>
    %206 = arith.maximumf %204, %205 : vector<1x256xf32>
    %207 = vector.extract_strided_slice %94 {offsets = [21, 0], sizes = [1, 256], strides = [1, 1]} : vector<32x256xf32> to vector<1x256xf32>
    %208 = arith.maximumf %206, %207 : vector<1x256xf32>
    %209 = vector.extract_strided_slice %94 {offsets = [19, 0], sizes = [1, 256], strides = [1, 1]} : vector<32x256xf32> to vector<1x256xf32>
    %210 = arith.maximumf %208, %209 : vector<1x256xf32>
    %211 = arith.addf %203, %210 : vector<1x256xf32>
    %cst_61 = arith.constant 5.000000e-01 : f32
    %212 = vector.broadcast %cst_61 : f32 to vector<1x256xf32>
    %213 = arith.mulf %211, %212 : vector<1x256xf32>
    %214 = vector.extract_strided_slice %94 {offsets = [9, 0], sizes = [1, 256], strides = [1, 1]} : vector<32x256xf32> to vector<1x256xf32>
    %215 = vector.extract_strided_slice %94 {offsets = [7, 0], sizes = [1, 256], strides = [1, 1]} : vector<32x256xf32> to vector<1x256xf32>
    %216 = arith.maximumf %214, %215 : vector<1x256xf32>
    %217 = vector.extract_strided_slice %94 {offsets = [27, 0], sizes = [1, 256], strides = [1, 1]} : vector<32x256xf32> to vector<1x256xf32>
    %218 = arith.maximumf %216, %217 : vector<1x256xf32>
    %219 = vector.extract_strided_slice %94 {offsets = [3, 0], sizes = [1, 256], strides = [1, 1]} : vector<32x256xf32> to vector<1x256xf32>
    %220 = arith.maximumf %218, %219 : vector<1x256xf32>
    %221 = vector.extract_strided_slice %94 {offsets = [0, 0], sizes = [1, 256], strides = [1, 1]} : vector<32x256xf32> to vector<1x256xf32>
    %222 = vector.extract_strided_slice %94 {offsets = [21, 0], sizes = [1, 256], strides = [1, 1]} : vector<32x256xf32> to vector<1x256xf32>
    %223 = arith.maximumf %221, %222 : vector<1x256xf32>
    %224 = vector.extract_strided_slice %94 {offsets = [15, 0], sizes = [1, 256], strides = [1, 1]} : vector<32x256xf32> to vector<1x256xf32>
    %225 = arith.maximumf %223, %224 : vector<1x256xf32>
    %226 = vector.extract_strided_slice %94 {offsets = [12, 0], sizes = [1, 256], strides = [1, 1]} : vector<32x256xf32> to vector<1x256xf32>
    %227 = arith.maximumf %225, %226 : vector<1x256xf32>
    %228 = arith.addf %220, %227 : vector<1x256xf32>
    %cst_62 = arith.constant 5.000000e-01 : f32
    %229 = vector.broadcast %cst_62 : f32 to vector<1x256xf32>
    %230 = arith.mulf %228, %229 : vector<1x256xf32>
    %231 = tpu.concatenate %111, %128, %145, %162, %179, %196, %213, %230 in 0 : vector<1x256xf32>, vector<1x256xf32>, vector<1x256xf32>, vector<1x256xf32>, vector<1x256xf32>, vector<1x256xf32>, vector<1x256xf32>, vector<1x256xf32> -> vector<8x256xf32>
    %c0_63 = arith.constant 0 : index
    %c0_64 = arith.constant 0 : index
    %c0_65 = arith.constant 0 : index
    %232 = vector.load %arg5[%c0_63, %c0_64, %c0_65] : memref<1x8x256xf32, #tpu.memory_space<vmem>>, vector<1x8x256xf32>
    %233 = vector.shape_cast %232 : vector<1x8x256xf32> to vector<8x256xf32>
    %234 = vector.shape_cast %231 : vector<8x256xf32> to vector<1x8x256xf32>
    tpu.vector_store %arg5[%c0_63, %c0_64, %c0_65], %234 {strides = array<i32>} : memref<1x8x256xf32, #tpu.memory_space<vmem>>, vector<1x8x256xf32>,
    return
  }
  func.func @transform_0(%arg0: i32, %arg1: i32) -> (i32, i32, i32, i32) {
    %c0_i32 = arith.constant 0 : i32
    %c0_i32_0 = arith.constant 0 : i32
    %c0_i32_1 = arith.constant 0 : i32
    return %arg0, %c0_i32, %c0_i32_0, %arg1 : i32, i32, i32, i32
  }
  func.func @transform_1(%arg0: i32, %arg1: i32) -> (i32, i32, i32) {
    %c0_i32 = arith.constant 0 : i32
    %c0_i32_0 = arith.constant 0 : i32
    %c0_i32_1 = arith.constant 0 : i32
    %c0_i32_2 = arith.constant 0 : i32
    return %c0_i32, %c0_i32_0, %c0_i32_1 : i32, i32, i32
  }
  func.func @transform_2(%arg0: i32, %arg1: i32) -> (i32, i32) {
    %c0_i32 = arith.constant 0 : i32
    %c0_i32_0 = arith.constant 0 : i32
    %c0_i32_1 = arith.constant 0 : i32
    return %c0_i32, %c0_i32_0 : i32, i32
  }
  func.func @transform_3(%arg0: i32, %arg1: i32) -> (i32, i32, i32) {
    %c0_i32 = arith.constant 0 : i32
    %c0_i32_0 = arith.constant 0 : i32
    return %arg0, %c0_i32, %arg1 : i32, i32, i32
  }
}

</mosaic_0001>

<bundles_post_ra>
// kernel: tpu_custom_call.1
= control target key start
LH: loop header
LB: loop body
LE: loop exit
PB: predicated region body
PF: predicated region fallthrough
CT: control target
= control target key end

     0   :  { %8 = vsyncpa [#allocation3], 0  ;;  %s2287_s0 = inlined_call_operand.hbm [shape: f32[2,9,4,256], index: 0, kind: input, shape index: {}]   ;;  %s2288_s1 = inlined_call_operand.vmem [shape: f32[9,4,8], index: 1, kind: input, shape index: {}]   ;;  %s2289_s2 = inlined_call_operand.vmem [shape: f32[4,8], index: 2, kind: input, shape index: {}]   ;;  %s2290_s3 = inlined_call_operand.hbm [shape: f32[2,8,256], index: 3, kind: output, shape index: {}]  }
   0x1   :  { %10 = vsyncpa [#allocation3 + $0x1], 0 }
   0x2   :  { %11 = vsyncpa [#allocation4], 0 }
   0x3   :  { %13 = vsyncpa [#allocation4 + $0x1], 0  ;;  %s1565_s12 = smov 0   ;;  %s1567_s13 = smov 0  }
   0x4   :  { %s1569_s14 = smov 0   ;;  %s1571_s15 = smov 0  }
   0x5   :  { %s1573_s16 = smov 0   ;;  %s1575_s17 = smov 0  }
   0x6 LB: > { %s1330_s18 = sadd.s32 4294967295, %s1541_s17   ;;  %s1331_s19 = sadd.s32 4294967294, %s1541_s17   ;;  %s1541_s17 = sphi %s1575_s17, %s19_s17   ;;  %s1537_s16 = sphi %s1573_s16, %s2319_s16   ;;  %s1533_s15 = sphi %s1571_s15, %s2318_s15   ;;  %s1529_s14 = sphi %s1569_s14, %s2317_s14   ;;  %s1525_s13 = sphi %s1567_s13, %s2316_s13   ;;  %s1521_s12 = sphi %s1565_s12, %s2315_s12  }
   0x7   : > { %s31_s20 = sadd.s32 1, %s1537_s16  ;;  %s40_s21 = sadd.s32 1, %s1529_s14 }
   0x8   : > { %p33_p0 = scmp.ge.s32.totalorder %s31_s20, 2  ;;  %p47_p1 = scmp.ne.s32.totalorder %s1529_s14, %s1525_s13 }
   0x9   : > { %p48_p2 = scmp.eq.s32.totalorder %s1541_s17, 0  ;;  %p53_p3 = scmp.ne.s32.totalorder %s1525_s13, %s1521_s12 }
   0xa   : > { %s2321_s20 = smov (%p33_p0, %s31_s20), 0  ;;  %p54_p5 = scmp.eq.s32.totalorder %s1330_s18, 0 }
   0xb   : > { %p1606_p4 = por %p48_p2, %p47_p1  ;;  %s35_s23 = ssub.s32 %s1537_s16, %s2321_s20 }
   0xc   : > { %p121_p6 = scmp.eq.s32.totalorder %s1330_s18, 1  ;;  %p38_p7 = scmp.eq.s32.totalorder %s35_s23, 0 }
   0xd   : > { %p1612_p8 = por %p54_p5, %p53_p3  ;;  %p127_p10 = scmp.eq.s32.totalorder %s1331_s19, 1 }
   0xe   : > { %p1616_p9 = por %p121_p6, %p47_p1  ;;  %p1333_p12 = scmp.ge.s32.totalorder %s1541_s17, 2 }
   0xf   : > { %s1621_s26 = scalar_select %p38_p7, %s1529_s14, %s40_s21  }
  0x10   : > { %p1623_p11 = por %p127_p10, %p53_p3  ;;  %p1374_p13 = scmp.lt.s32.totalorder %s1541_s17, 2 }
  0x11   : > { %s153_s28 = sand.u32 1, %s1529_s14   ;;  %s1360_s30 = smul.u32 72, %s1537_s16 }
  0x12   : > { %s1359_s29 = smul.u32 72, %s153_s28  ;;  %p1367_p0 = pnand %p1374_p13, %p1606_p4 }
  0x13   : > { %s164_s6 = scalar_lea.hbm %s2287_s0, %s1360_s30  ;;  %p1335_p1 = scmp.ge.s32.totalorder %s1541_s17, 1 }
  0x14   : > { %s157_s7 = scalar_lea.vmem [#allocation2], %s1359_s29  ;;  %s165_s9 = sshll.u32 %s164_s6, 4  ;;  %s166_s9 = int_to_ptr.hbm [resolvable:$true] %s165_s9 }
  0x15   : > { %s167_s8 = sshll.u32 %s157_s7, 4  ;;  %s154_s10 = scalar_lea.sflag [#allocation3], %s153_s28  ;;  %s168_s8 = int_to_ptr.vmem [resolvable:$true] %s167_s8 }
  0x16   : > { %s1543_s11 = smov 128   ;;  %s1544_s18 = smov 8  }
  0x17   : > { %1369 = dma.hbm_to_vmem [thread:$0]  (!%p1367_p0), %s166_s9, 1152, %s168_s8, %s154_s10, %s1543_s11, %s1543_s11, %s1544_s18  }
  0x18   : > { %p175_p2 = scmp.lt.s32.totalorder %s1541_s17, 3 }
  0x1a   : > { %p176_p3 = pnand %p1335_p1, %p175_p2 }
  0x1c   : > { %179 = sbr.rel (%p176_p3) target bundleno = 322 (0x142), region = 32 }
  0x21   : > { %s1639_s19 = sand.u32 1, %s1525_s13  }
  0x22   : > { %s1361_s21 = smul.u32 72, %s1639_s19  ;;  %s182_s22 = scalar_lea.sflag [#allocation3], %s1639_s19 }
  0x24   : > { %s1643_s23 = scalar_lea.vmem [#allocation2], %s1361_s21 }
  0x25   : > { %1512 = dma.done.wait (%p1612_p8), %s182_s22, 1152  }
  0x26   : > { %1514 = vsyncadd (%p1612_p8), %s182_s22, 4294966144  ;;  %v213_v0 = vlaneseq  ;;  %v241_v2 = vld [vmem:[%s2288_s1] sm:$0xf]  ;;  %v1338_v10 = vld [vmem:[%s2288_s1 + $0x4] sm:$0xf]  ;;  %vm244_vm0 = vcmask 1040384  }
  0x27   : > { %v211_v3 = vld [vmem:[%s2289_s2] sm:$0xf]  ;;  %v255_v4 = vperm.slane %v241_v2, 0  ;;  %v262_v7 = vperm.slane %v241_v2, 1  ;;  %v328_v11 = vperm.slane %v1338_v10, 0  ;;  %v276_v12 = vperm.slane %v241_v2, 3 }
  0x28   : > { %v214_v1 = vshrl.u32 %v213_v0, 7  ;;  %v226_v5 = vperm.slane %v211_v3, 2  ;;  %v212_v6 = vperm.slane %v211_v3, 0  ;;  %v233_v8 = vperm.slane %v211_v3, 3  ;;  %v1340_v17 = vld [vmem:[%s2288_s1 + $0x8] sm:$0xf] }
  0x29   : > { %v219_v9 = vperm.slane %v211_v3, 1  ;;  %v269_v13 = vperm.slane %v241_v2, 2  ;;  %v349_v14 = vperm.slane %v1338_v10, 3  ;;  %v342_v15 = vperm.slane %v1338_v10, 2  ;;  %v1342_v21 = vld [vmem:[%s2288_s1 + $0xc] sm:$0xf] }
  0x2a   : > { %1428 = vset.pattern.permute.xlu2 %v214_v1  ;;  %1427 = vset.pattern.permute.xlu1 %v214_v1  ;;  %v335_v16 = vperm.slane %v1338_v10, 1  ;;  %v415_v18 = vperm.slane %v1340_v17, 2  ;;  %v408_v19 = vperm.slane %v1340_v17, 1  ;;  %v401_v20 = vperm.slane %v1340_v17, 0  ;;  %v1344_v25 = vld [vmem:[%s2288_s1 + $0x10] sm:$0xf] }
  0x2b   : > { %1426 = vset.pattern.permute.xlu0 %v214_v1  ;;  %v481_v22 = vperm.slane %v1342_v21, 1  ;;  %v474_v23 = vperm.slane %v1342_v21, 0  ;;  %v422_v24 = vperm.slane %v1340_v17, 3  ;;  %v547_v26 = vperm.slane %v1344_v25, 0  ;;  %v1346_v32 = vld [vmem:[%s2288_s1 + $0x14] sm:$0xf] }
  0x2c   : > { %v495_v27 = vperm.slane %v1342_v21, 3  ;;  %v488_v28 = vperm.slane %v1342_v21, 2  ;;  %v568_v29 = vperm.slane %v1344_v25, 3  ;;  %v561_v30 = vperm.slane %v1344_v25, 2  ;;  %v1348_v36 = vld [vmem:[%s2288_s1 + $0x18] sm:$0xf] }
  0x2d   : > { %v554_v31 = vperm.slane %v1344_v25, 1  ;;  %v634_v33 = vperm.slane %v1346_v32, 2  ;;  %v627_v34 = vperm.slane %v1346_v32, 1  ;;  %v620_v35 = vperm.slane %v1346_v32, 0  ;;  %v1350_v40 = vld [vmem:[%s2288_s1 + $0x1c] sm:$0xf] }
  0x2e   : > { %v714_v37 = vperm.slane %v1348_v36, 3  ;;  %v693_v38 = vperm.slane %v1348_v36, 0  ;;  %v641_v39 = vperm.slane %v1346_v32, 3  ;;  %v766_v41 = vperm.slane %v1350_v40, 0  ;;  %v1352_v47 = vld [vmem:[%s2288_s1 + $0x20] sm:$0xf] }
  0x2f   : > { %v707_v42 = vperm.slane %v1348_v36, 2  ;;  %v700_v43 = vperm.slane %v1348_v36, 1  ;;  %v780_v44 = vperm.slane %v1350_v40, 2  ;;  %v773_v45 = vperm.slane %v1350_v40, 1  ;;  %v240_v52 = vld [vmem:[%s1643_s23] sm:$0xff]  ;;  %v1681_v54 = vld [vmem:[%s1643_s23 + $0x8] sm:$0xff] }
  0x30   : > { %v787_v46 = vperm.slane %v1350_v40, 3  ;;  %v846_v49 = vperm.slane %v1352_v47, 1  ;;  %v860_v50 = vperm.slane %v1352_v47, 3  ;;  %v839_v51 = vperm.slane %v1352_v47, 0  ;;  %s1358_s5 = sshll.u32 %s1533_s15, 4  ;;  %s1228_s11 = scalar_lea.sflag [#allocation4], %s1639_s19 }
  0x31   : > { %v243_v55 = vrot.slane %v240_v52, 3  ;;  %v853_v56 = vperm.slane %v1352_v47, 2  ;;  %v1684_v57 = vrot.slane %v1681_v54, 3  ;;  %vm246_vm1 = vcmask 1041409   ;;  %s1241_s15 = scalar_lea.hbm %s2290_s3, %s1358_s5  ;;  %s1479_s29 = scalar_lea.hbm %s2290_s3, 32 }
  0x32   : > { %260 = vperm.xlu2 %1428, %v255_v4   ;;  %231 = vperm.xlu1 %1427, %v226_v5   ;;  %vm252_vm2 = vcmask 1043459   ;;  %vm249_vm3 = vcmask 1042434   ;;  %vm1207_vm4 = vcmask 1041408   ;;  %vm1210_vm5 = vcmask 1042432   ;;  %s1245_s10 = sshll.u32 %s1241_s15, 4  ;;  %s1246_s10 = int_to_ptr.hbm [resolvable:$true] %s1245_s10 }
  0x33   : > { %217 = vperm.xlu0 %1426, %v212_v6   ;;  %v245_v58 = vsel %vm244_vm0, %v240_v52, %v243_v55  ;;  %v321_v60 = vsel %vm244_vm0, %v1681_v54, %v1684_v57  ;;  %v247_v63 = vsel %vm246_vm1, %v240_v52, %v243_v55  ;;  %vm1213_vm6 = vcmask 1043456   ;;  %s1473_s18 = sshra.s32 %s1246_s10, 4  ;;  %s1474_s18 = int_to_ptr.hbm [resolvable:$true] %s1473_s18 }
  0x34   : > { %v283_v61 = vperm.slane %v245_v58, 0  ;;  %v284_v62 = vperm.slane %v245_v58, 1  ;;  %v356_v0 = vperm.slane %v321_v60, 0  ;;  %v357_v1 = vperm.slane %v321_v60, 1  ;;  %s1475_s21 = scalar_lea.hbm %s1474_s18, 16  ;;  %p1480_p7 = scmp.lt.s32.totalorder %s1474_s18, %s2290_s3 }
  0x35   : > { %v248_v4 = vrot.slane %v247_v63, 1  ;;  %v326_v63 = vsel %vm252_vm2, %v1681_v54, %v1684_v57  ;;  %vm1216_vm7 = vcmask 1044480   ;;  %vm1219_vm8 = vcmask 1045504   ;;  %p1476_p4 = scmp.ne.s32.totalorder %s1474_s18, %s1475_s21  ;;  %p1481_p8 = scmp.lt.s32.totalorder %s1479_s29, %s1475_s21 }
  0x36   : > { %vm1222_vm9 = vcmask 1046528  }
  0x37   : > { %v285_v10 = vperm.slane %v248_v4, 0  ;;  %p1477_p5 = pnand %p1476_p4, %p1616_p9  ;;  %p1482_p10 = por %p1481_p8, %p1480_p7 }
  0x39   : > { %p1478_p6 = pneg %p1477_p5 }
  0x3a   : > { %267 = vperm.xlu2 %1428, %v262_v7   ;;  %238 = vperm.xlu1 %1427, %v233_v8  }
  0x3b   : > { %224 = vperm.xlu0 %1426, %v219_v9   ;;  %p1483_p13 = pnand %p1482_p10, %p1478_p6 }
  0x42   : > { %333 = vperm.xlu2 %1428, %v328_v11   ;;  %281 = vperm.xlu1 %1427, %v276_v12   ;;  %v286_v11 = vperm.slane %v248_v4, 1  ;;  %v327_v4 = vrot.slane %v326_v63, 3 }
  0x43   : > { %274 = vperm.xlu0 %1426, %v269_v13  }
  0x4a   : > { %354 = vperm.xlu2 %1428, %v349_v14   ;;  %347 = vperm.xlu1 %1427, %v342_v15  }
  0x4b   : > { %340 = vperm.xlu0 %1426, %v335_v16  }
  0x52   : > { %420 = vperm.xlu2 %1428, %v415_v18   ;;  %413 = vperm.xlu1 %1427, %v408_v19   ;;  %v253_v18 = vsel %vm252_vm2, %v240_v52, %v243_v55  ;;  %v250_v19 = vsel %vm249_vm3, %v240_v52, %v243_v55  ;;  %v1341_v55 = vld [vmem:[%s1643_s23 + $0x18] sm:$0xff] }
  0x53   : > { %406 = vperm.xlu0 %1426, %v401_v20  }
  0x5a   : > { %486 = vperm.xlu2 %1428, %v481_v22   ;;  %479 = vperm.xlu1 %1427, %v474_v23   ;;  %v254_v23 = vrot.slane %v253_v18, 3  ;;  %v362_v18 = vperm.slane %v327_v4, 0 }
  0x5b   : > { %427 = vperm.xlu0 %1426, %v422_v24  }
  0x62   : > { %552 = vperm.xlu2 %1428, %v547_v26   ;;  %500 = vperm.xlu1 %1427, %v495_v27   ;;  %v251_v26 = vrot.slane %v250_v19, 2  ;;  %v289_v27 = vperm.slane %v254_v23, 0  ;;  %v363_v19 = vperm.slane %v327_v4, 1 }
  0x63   : > { %493 = vperm.xlu0 %1426, %v488_v28   ;;  %v290_v28 = vperm.slane %v254_v23, 1 }
  0x6a   : > { %573 = vperm.xlu2 %1428, %v568_v29   ;;  %566 = vperm.xlu1 %1427, %v561_v30   ;;  %v287_v29 = vperm.slane %v251_v26, 0  ;;  %v288_v30 = vperm.slane %v251_v26, 1 }
  0x6b   : > { %559 = vperm.xlu0 %1426, %v554_v31   ;;  %v322_v31 = vsel %vm246_vm1, %v1681_v54, %v1684_v57 }
  0x72   : > { %639 = vperm.xlu2 %1428, %v634_v33   ;;  %632 = vperm.xlu1 %1427, %v627_v34  }
  0x73   : > { %625 = vperm.xlu0 %1426, %v620_v35  }
  0x7a   : > { %719 = vperm.xlu2 %1428, %v714_v37   ;;  %698 = vperm.xlu1 %1427, %v693_v38  }
  0x7b   : > { %646 = vperm.xlu0 %1426, %v641_v39   ;;  %v323_v39 = vrot.slane %v322_v31, 1 }
  0x82   : > { %771 = vperm.xlu2 %1428, %v766_v41   ;;  %712 = vperm.xlu1 %1427, %v707_v42  }
  0x83   : > { %705 = vperm.xlu0 %1426, %v700_v43  }
  0x8a   : > { %785 = vperm.xlu2 %1428, %v780_v44   ;;  %778 = vperm.xlu1 %1427, %v773_v45   ;;  %v358_v44 = vperm.slane %v323_v39, 0  ;;  %v359_v45 = vperm.slane %v323_v39, 1 }
  0x8b   : > { %792 = vperm.xlu0 %1426, %v787_v46  }
  0x8c   : > { %v261_v48 = vpop.permute.xlu2 %260 }
  0x8d   : > { %v299_v2 = vmul.f32 %v283_v61, %v261_v48  ;;  %v300_v3 = vmul.f32 %v284_v62, %v261_v48  ;;  %v1729_v61 = vld [vmem:[%s1643_s23 + $0x20] sm:$0xff] }
  0x92   : > { %851 = vperm.xlu2 %1428, %v846_v49   ;;  %865 = vperm.xlu1 %1427, %v860_v50  }
  0x93   : > { %844 = vperm.xlu0 %1426, %v839_v51  }
  0x94   : > { %v268_v53 = vpop.permute.xlu2 %267 }
  0x95   : > { %v301_v16 = vmul.f32 %v285_v10, %v268_v53  ;;  %v302_v17 = vmul.f32 %v286_v11, %v268_v53  ;;  %v1339_v53 = vld [vmem:[%s1643_s23 + $0x10] sm:$0xff] }
  0x96   : > { %v393_v58 = vrot.slane %v1339_v53, 3 }
  0x98   : > { %v399_v31 = vsel %vm252_vm2, %v1339_v53, %v393_v58 }
  0x9b   : > { %858 = vperm.xlu0 %1426, %v853_v56  }
  0x9c   : > { %v334_v59 = vpop.permute.xlu2 %333 }
  0x9d   : > { %v372_v5 = vmul.f32 %v356_v0, %v334_v59  ;;  %v373_v6 = vmul.f32 %v357_v1, %v334_v59  ;;  %v466_v59 = vrot.slane %v1341_v55, 3  ;;  %v1737_v0 = vld [vmem:[%s1643_s23 + $0x28] sm:$0xff]  ;;  %v397_v1 = vsel %vm249_vm3, %v1339_v53, %v393_v58 }
  0x9f   : > { %v470_v4 = vsel %vm249_vm3, %v1341_v55, %v466_v59 }
  0xa4   : > { %v1691_v7 = vpop.permute.xlu2 %354  ;;  %v232_v8 = vpop.permute.xlu1 %231 }
  0xa5   : > { %v218_v9 = vpop.permute.xlu0 %217 }
  0xa6   : > { %v307_v12 = vadd.f32 %v299_v2, %v218_v9  ;;  %v308_v13 = vadd.f32 %v300_v3, %v218_v9  ;;  %v468_v2 = vsel %vm246_vm1, %v1341_v55, %v466_v59  ;;  %v1742_v3 = vrot.slane %v1729_v61, 3 }
  0xa7   : > { %v398_v9 = vrot.slane %v397_v1, 2  ;;  %v469_v10 = vrot.slane %v468_v2, 1 }
  0xa8   : > { %v1693_v14 = vadd.f32 %v372_v5, %v307_v12  ;;  %v1695_v15 = vadd.f32 %v373_v6, %v308_v13  ;;  %v324_v5 = vsel %vm249_vm3, %v1681_v54, %v1684_v57  ;;  %v1748_v6 = vrot.slane %v1737_v0, 3 }
  0xa9   : > { %v545_v11 = vsel %vm252_vm2, %v1729_v61, %v1742_v3  ;;  %v395_v13 = vsel %vm246_vm1, %v1339_v53, %v393_v58  ;;  %v1764_v54 = vsel %vm244_vm0, %v1729_v61, %v1742_v3  ;;  %v325_v57 = vrot.slane %v324_v5, 2 }
  0xaa   : > { %v433_v23 = vperm.slane %v398_v9, 0  ;;  %v396_v26 = vrot.slane %v395_v13, 1 }
  0xac   : > { %v1699_v20 = vpop.permute.xlu2 %420  ;;  %v239_v21 = vpop.permute.xlu1 %238 }
  0xad   : > { %v225_v22 = vpop.permute.xlu0 %224 }
  0xae   : > { %v309_v24 = vadd.f32 %v301_v16, %v225_v22  ;;  %v310_v25 = vadd.f32 %v302_v17, %v225_v22  ;;  %v616_v22 = vsel %vm249_vm3, %v1737_v0, %v1748_v6 }
  0xb4   : > { %v1704_v32 = vpop.permute.xlu2 %486  ;;  %v282_v33 = vpop.permute.xlu1 %281 }
  0xb5   : > { %v305_v34 = vmul.f32 %v289_v27, %v282_v33  ;;  %v306_v35 = vmul.f32 %v290_v28, %v282_v33  ;;  %v275_v36 = vpop.permute.xlu0 %274  ;;  %v505_v27 = vperm.slane %v469_v10, 1  ;;  %v360_v33 = vperm.slane %v325_v57, 0 }
  0xb6   : > { %v303_v37 = vmul.f32 %v287_v29, %v275_v36  ;;  %v304_v38 = vmul.f32 %v288_v30, %v275_v36 }
  0xb7   : > { %v1706_v40 = vadd.f32 %v305_v34, %v239_v21  ;;  %v1708_v41 = vadd.f32 %v306_v35, %v239_v21  ;;  %v546_v21 = vrot.slane %v545_v11, 3  ;;  %v1778_v34 = vsel %vm244_vm0, %v1339_v53, %v393_v58  ;;  %v1794_v58 = vld [vmem:[%s1643_s23 + $0x38] sm:$0xff] }
  0xb8   : > { %v1710_v42 = vadd.f32 %v303_v37, %v232_v8  ;;  %v1712_v43 = vadd.f32 %v304_v38, %v232_v8  ;;  %v1751_v8 = vld [vmem:[%s1643_s23 + $0x30] sm:$0xff]  ;;  %v617_v35 = vrot.slane %v616_v22, 2  ;;  %v361_v37 = vperm.slane %v325_v57, 1 }
  0xb9   : > { %v1767_v17 = vrot.slane %v1751_v8, 3  ;;  %v1783_v38 = vperm.slane %v546_v21, 0  ;;  %v1785_v39 = vperm.slane %v546_v21, 1  ;;  %v429_v63 = vperm.slane %v1778_v34, 0 }
  0xba   : > { %v430_v1 = vperm.slane %v1778_v34, 1  ;;  %v1803_v11 = vperm.slane %v617_v35, 0  ;;  %v1805_v57 = vperm.slane %v617_v35, 1  ;;  %v543_v35 = vsel %vm249_vm3, %v1729_v61, %v1742_v3 }
  0xbb   : > { %v691_v36 = vsel %vm252_vm2, %v1751_v8, %v1767_v17  ;;  %v614_v21 = vsel %vm246_vm1, %v1737_v0, %v1748_v6 }
  0xbc   : > { %v1714_v46 = vpop.permute.xlu1 %347  ;;  %v1716_v47 = vpop.permute.xlu2 %552  ;;  %v692_v2 = vrot.slane %v691_v36, 3 }
  0xbd   : > { %v341_v48 = vpop.permute.xlu0 %340  ;;  %v376_v36 = vmul.f32 %v360_v33, %v1714_v46 }
  0xbe   : > { %v374_v49 = vmul.f32 %v358_v44, %v341_v48  ;;  %v375_v50 = vmul.f32 %v359_v45, %v341_v48  ;;  %v472_v44 = vsel %vm252_vm2, %v1341_v55, %v466_v59  ;;  %v431_v45 = vperm.slane %v396_v26, 0 }
  0xbf   : > { %v432_v48 = vperm.slane %v396_v26, 1  ;;  %v473_v13 = vrot.slane %v472_v44, 3  ;;  %v1810_v26 = vrot.slane %v1794_v58, 3  ;;  %v1820_v34 = vperm.slane %v692_v2, 1 }
  0xc0   : > { %v1718_v51 = vadd.f32 %v374_v49, %v309_v24  ;;  %v1720_v52 = vadd.f32 %v375_v50, %v310_v25  ;;  %v434_v24 = vperm.slane %v398_v9, 1  ;;  %v504_v25 = vperm.slane %v469_v10, 0 }
  0xc1   : > { %v1789_v49 = vsel %vm244_vm0, %v1341_v55, %v466_v59  ;;  %v400_v50 = vrot.slane %v399_v31, 3  ;;  %v378_v9 = vmul.f32 %v362_v18, %v1691_v7  ;;  %v379_v10 = vmul.f32 %v363_v19, %v1691_v7  ;;  %2299 = vst [vmem:[#allocation9_spill] sm:$0xff] %v1820_v34 }
  0xc2   : > { %v449_v55 = vmul.f32 %v433_v23, %v1699_v20  ;;  %v450_v59 = vmul.f32 %v434_v24, %v1699_v20  ;;  %v471_v7 = vrot.slane %v470_v4, 2  ;;  %v1818_v31 = vperm.slane %v692_v2, 0  ;;  %v1833_v24 = vld [vmem:[%s1643_s23 + $0x40] sm:$0xff]  ;;  %s1336_s23 = sshll.u32 %s1639_s19, 4 }
  0xc3   : > { %v1814_v18 = vperm.slane %v400_v50, 0  ;;  %v1816_v19 = vperm.slane %v400_v50, 1  ;;  %v377_v44 = vmul.f32 %v361_v37, %v1714_v46  ;;  %v1827_v23 = vperm.slane %v473_v13, 0  ;;  %s208_s8 = scalar_lea.vmem [#allocation5], %s1336_s23 }
  0xc4   : > { %v1724_v56 = vpop.permute.xlu1 %413  ;;  %v1731_v62 = vpop.permute.xlu2 %573  ;;  %2298 = vst [vmem:[#allocation8_spill] sm:$0xff] %v1818_v31  ;;  %v541_v20 = vsel %vm246_vm1, %v1729_v61, %v1742_v3  ;;  %v520_v50 = vmul.f32 %v504_v25, %v1704_v32  ;;  %v521_v2 = vmul.f32 %v505_v27, %v1704_v32  ;;  %v1839_v22 = vperm.slane %v473_v13, 1  ;;  %s1243_s9 = sshll.u32 %s208_s8, 4  ;;  %s1244_s9 = int_to_ptr.vmem [resolvable:$true] %s1243_s9 }
  0xc5   : > { %v1726_v60 = vpop.permute.xlu0 %406  ;;  %v1844_v46 = vsel %vm244_vm0, %v1794_v58, %v1810_v26  ;;  %v1846_v33 = vperm.slane %v471_v7, 0  ;;  %v1848_v37 = vperm.slane %v471_v7, 1  ;;  %v544_v61 = vrot.slane %v543_v35, 2 }
  0xc6   : > { %v762_v32 = vsel %vm249_vm3, %v1794_v58, %v1810_v26  ;;  %v1856_v25 = vadd.f32 %v378_v9, %v1706_v40  ;;  %v542_v27 = vrot.slane %v541_v20, 1  ;;  %v1864_v7 = vrot.slane %v1833_v24, 3 }
  0xc7   : > { %v384_v35 = vadd.f32 %v376_v36, %v1710_v42  ;;  %v385_v29 = vadd.f32 %v377_v44, %v1712_v43  ;;  %v387_v28 = vadd.f32 %v379_v10, %v1708_v41  ;;  %v794_v34 = vperm.slane %v1844_v46, 0 }
  0xc8   : > { %v447_v40 = vmul.f32 %v431_v45, %v1724_v56  ;;  %v448_v9 = vmul.f32 %v432_v48, %v1724_v56  ;;  %v795_v20 = vperm.slane %v1844_v46, 1  ;;  %v763_v31 = vrot.slane %v762_v32, 2 }
  0xc9   : > { %v580_v42 = vperm.slane %v544_v61, 1  ;;  %v615_v36 = vrot.slane %v614_v21, 1  ;;  %v2304_v41 = vperm.slane %v1764_v54, 1  ;;  %v1883_v10 = vperm.slane %v542_v27, 0 }
  0xca   : > { %v1885_v45 = vperm.slane %v542_v27, 1  ;;  %v833_v56 = vsel %vm246_vm1, %v1833_v24, %v1864_v7  ;;  %v445_v48 = vmul.f32 %v429_v63, %v1726_v60  ;;  %v457_v44 = vadd.f32 %v449_v55, %v384_v35 }
  0xcb   : > { %v1881_v43 = vmul.f32 %v2304_v41, %v1716_v47  ;;  %v1894_v21 = vsel %vm244_vm0, %v1737_v0, %v1748_v6  ;;  %v1899_v32 = vperm.slane %v763_v31, 0  ;;  %v1901_v27 = vperm.slane %v763_v31, 1 }
  0xcc   : > { %v1756_v12 = vpop.permute.xlu1 %479  ;;  %v1774_v30 = vpop.permute.xlu2 %639  ;;  %v1903_v41 = vperm.slane %v615_v36, 0  ;;  %v1905_v63 = vperm.slane %v615_v36, 1  ;;  %v834_v55 = vrot.slane %v833_v56, 1  ;;  %v618_v31 = vsel %vm252_vm2, %v1737_v0, %v1748_v6 }
  0xcd   : > { %v1759_v16 = vpop.permute.xlu0 %427  ;;  %v598_v35 = vmul.f32 %v1785_v39, %v1731_v62  ;;  %v1931_v36 = vsel %vm244_vm0, %v1751_v8, %v1767_v17  ;;  %v2312_v46 = vperm.slane %v1894_v21, 1 }
  0xce   : > { %v1943_v39 = vperm.slane %v834_v55, 0 }
  0xd4   : > { %v1791_v53 = vpop.permute.xlu1 %500  ;;  %v1837_v4 = vpop.permute.xlu2 %719 }
  0xd5   : > { %v1799_v5 = vpop.permute.xlu0 %493  ;;  %2300 = vst [vmem:[#allocation10_spill] sm:$0xff] %v1837_v4  ;;  %v2303_v4 = vperm.slane %v1764_v54, 0  ;;  %v456_v54 = vadd.f32 %v448_v9, %v1720_v52  ;;  %v648_v52 = vperm.slane %v1894_v21, 0  ;;  %v2313_v21 = vperm.slane %v1931_v36, 0 }
  0xdc   : > { %v1850_v3 = vpop.permute.xlu1 %566 }
  0xdd   : > { %2301 = vst [vmem:[#allocation11_spill] sm:$0xff] %v1850_v3  ;;  %v1858_v13 = vpop.permute.xlu0 %559  ;;  %v579_v3 = vperm.slane %v544_v61, 0  ;;  %v446_v61 = vmul.f32 %v430_v1, %v1726_v60  ;;  %v2306_v60 = vperm.slane %v1789_v49, 1 }
  0xde   : > { %2302 = vst [vmem:[#allocation12_spill] sm:$0xff] %v1858_v13  ;;  %v1876_v13 = vmul.f32 %v2303_v4, %v1716_v47  ;;  %v458_v4 = vadd.f32 %v450_v59, %v385_v29  ;;  %v455_v47 = vadd.f32 %v447_v40, %v1718_v51  ;;  %v1911_v59 = vmul.f32 %v1783_v38, %v1731_v62  ;;  %v1913_v51 = vpop.permute.xlu2 %771 }
  0xdf   : > { %v453_v40 = vadd.f32 %v445_v48, %v1693_v14  ;;  %v2305_v38 = vperm.slane %v1789_v49, 0  ;;  %v454_v56 = vadd.f32 %v446_v61, %v1695_v15  ;;  %v519_v0 = vmul.f32 %v2306_v60, %v1756_v12 }
  0xe0   : > { %v1937_v6 = vadd.f32 %v520_v50, %v455_v47  ;;  %v1939_v62 = vadd.f32 %v521_v2, %v456_v54  ;;  %v451_v14 = vmul.f32 %v1814_v18, %v1759_v16  ;;  %v619_v48 = vrot.slane %v618_v31, 3 }
  0xe1   : > { %v518_v9 = vmul.f32 %v2305_v38, %v1756_v12  ;;  %v689_v38 = vsel %vm249_vm3, %v1751_v8, %v1767_v17  ;;  %v452_v15 = vmul.f32 %v1816_v19, %v1759_v16  ;;  %v1950_v61 = vperm.slane %v834_v55, 1 }
  0xe2   : > { %v668_v50 = vmul.f32 %v1803_v11, %v1774_v30  ;;  %v669_v18 = vmul.f32 %v1805_v57, %v1774_v30  ;;  %v687_v47 = vsel %vm246_vm1, %v1751_v8, %v1767_v17  ;;  %v527_v54 = vadd.f32 %v519_v0, %v454_v56 }
  0xe3   : > { %v526_v2 = vadd.f32 %v518_v9, %v453_v40  ;;  %v524_v16 = vmul.f32 %v1827_v23, %v1791_v53  ;;  %v525_v19 = vmul.f32 %v1839_v22, %v1791_v53  ;;  %v690_v55 = vrot.slane %v689_v38, 2 }
  0xe4   : > { %v1907_v29 = vpop.permute.xlu1 %632  ;;  %v459_v60 = vadd.f32 %v451_v14, %v1856_v25  ;;  %v522_v11 = vmul.f32 %v1846_v33, %v1799_v5  ;;  %v523_v30 = vmul.f32 %v1848_v37, %v1799_v5  ;;  %v654_v31 = vperm.slane %v619_v48, 0  ;;  %v2307_v22 = vld [vmem:[#allocation11_spill] sm:$0xff] }
  0xe5   : > { %v1917_v1 = vpop.permute.xlu0 %625  ;;  %v460_v40 = vadd.f32 %v452_v15, %v387_v28  ;;  %v688_v17 = vrot.slane %v687_v47, 1  ;;  %v760_v23 = vsel %vm246_vm1, %v1794_v58, %v1810_v26  ;;  %v764_v53 = vsel %vm252_vm2, %v1794_v58, %v1810_v26 }
  0xe6   : > { %v595_v25 = vmul.f32 %v579_v3, %v2307_v22  ;;  %v596_v33 = vmul.f32 %v580_v42, %v2307_v22  ;;  %v599_v9 = vadd.f32 %v1876_v13, %v526_v2  ;;  %v655_v5 = vperm.slane %v619_v48, 1  ;;  %v1979_v28 = vpop.permute.xlu2 %785  ;;  %v2308_v48 = vld [vmem:[#allocation12_spill] sm:$0xff] }
  0xe7   : > { %v532_v37 = vadd.f32 %v524_v16, %v459_v60  ;;  %v533_v56 = vadd.f32 %v525_v19, %v460_v40  ;;  %v600_v0 = vadd.f32 %v1881_v43, %v527_v54  ;;  %v725_v14 = vperm.slane %v690_v55, 0  ;;  %v2309_v54 = vld [vmem:[#allocation10_spill] sm:$0xff]  ;;  %v2311_v16 = vld [vmem:[#allocation9_spill] sm:$0xff] }
  0xe8   : > { %v530_v38 = vadd.f32 %v522_v11, %v457_v44  ;;  %v531_v15 = vadd.f32 %v523_v30, %v458_v4  ;;  %v761_v47 = vrot.slane %v760_v23, 1  ;;  %v765_v49 = vrot.slane %v764_v53, 3  ;;  %v2310_v44 = vld [vmem:[#allocation8_spill] sm:$0xff] }
  0xe9   : > { %v726_v12 = vperm.slane %v690_v55, 1  ;;  %v723_v58 = vperm.slane %v688_v17, 0  ;;  %v724_v26 = vperm.slane %v688_v17, 1  ;;  %v837_v3 = vsel %vm252_vm2, %v1833_v24, %v1864_v7 }
  0xea   : > { %v603_v13 = vadd.f32 %v595_v25, %v530_v38  ;;  %v604_v42 = vadd.f32 %v596_v33, %v531_v15  ;;  %v593_v2 = vmul.f32 %v1883_v10, %v2308_v48  ;;  %v594_v43 = vmul.f32 %v1885_v45, %v2308_v48 }
  0xeb   : > { %v1991_v4 = vmul.f32 %v2310_v44, %v2309_v54  ;;  %v1995_v19 = vmul.f32 %v2311_v16, %v2309_v54  ;;  %v605_v55 = vadd.f32 %v1911_v59, %v532_v37  ;;  %v606_v60 = vadd.f32 %v598_v35, %v533_v56 }
  0xec   : > { %v699_v57 = vpop.permute.xlu1 %698  ;;  %v796_v30 = vperm.slane %v761_v47, 0  ;;  %v797_v40 = vperm.slane %v761_v47, 1  ;;  %v800_v17 = vperm.slane %v765_v49, 0  ;;  %v838_v23 = vrot.slane %v837_v3, 3 }
  0xed   : > { %v647_v8 = vpop.permute.xlu0 %646  ;;  %v810_v10 = vmul.f32 %v794_v34, %v1913_v51  ;;  %v811_v45 = vmul.f32 %v795_v20, %v1913_v51  ;;  %v666_v53 = vmul.f32 %v1903_v41, %v1907_v29  ;;  %v801_v25 = vperm.slane %v765_v49, 1 }
  0xee   : > { %v601_v59 = vadd.f32 %v593_v2, %v1937_v6  ;;  %v602_v35 = vadd.f32 %v594_v43, %v1939_v62  ;;  %v676_v33 = vadd.f32 %v668_v50, %v603_v13  ;;  %v677_v37 = vadd.f32 %v669_v18, %v604_v42  ;;  %v852_v49 = vpop.permute.xlu2 %851 }
  0xef   : > { %v667_v56 = vmul.f32 %v1905_v63, %v1907_v29  ;;  %v664_v34 = vmul.f32 %v648_v52, %v1917_v1  ;;  %v665_v20 = vmul.f32 %v2312_v46, %v1917_v1  ;;  %v2019_v41 = vsel %vm244_vm0, %v1833_v24, %v1864_v7 }
  0xf0   : > { %v670_v51 = vmul.f32 %v654_v31, %v647_v8  ;;  %v671_v6 = vmul.f32 %v655_v5, %v647_v8  ;;  %v873_v62 = vperm.slane %v838_v23, 0  ;;  %v835_v63 = vsel %vm249_vm3, %v1833_v24, %v1864_v7 }
  0xf1   : > { %v674_v29 = vadd.f32 %v666_v53, %v601_v59  ;;  %v874_v18 = vperm.slane %v838_v23, 1  ;;  %v737_v1 = vmul.f32 %v2313_v21, %v699_v57  ;;  %v2314_v38 = vperm.slane %v1931_v36, 1 }
  0xf2   : > { %v675_v31 = vadd.f32 %v667_v56, %v602_v35  ;;  %v672_v8 = vadd.f32 %v664_v34, %v599_v9  ;;  %v673_v5 = vadd.f32 %v665_v20, %v600_v0  ;;  %v836_v13 = vrot.slane %v835_v63, 2 }
  0xf3   : > { %v738_v15 = vmul.f32 %v2314_v38, %v699_v57  ;;  %v885_v42 = vmul.f32 %v1943_v39, %v852_v49  ;;  %v886_v24 = vmul.f32 %v1950_v61, %v852_v49  ;;  %v678_v7 = vadd.f32 %v670_v51, %v605_v55 }
  0xf4   : > { %v713_v11 = vpop.permute.xlu1 %712  ;;  %v745_v36 = vadd.f32 %v737_v1, %v672_v8  ;;  %v814_v39 = vmul.f32 %v1899_v32, %v1979_v28  ;;  %v815_v61 = vmul.f32 %v1901_v27, %v1979_v28  ;;  %v867_v55 = vperm.slane %v2019_v41, 0 }
  0xf5   : > { %v706_v22 = vpop.permute.xlu0 %705  ;;  %v741_v47 = vmul.f32 %v725_v14, %v713_v11  ;;  %v742_v3 = vmul.f32 %v726_v12, %v713_v11  ;;  %v746_v57 = vadd.f32 %v738_v15, %v673_v5  ;;  %v751_v23 = vadd.f32 %v1991_v4, %v678_v7 }
  0xf6   : > { %v739_v50 = vmul.f32 %v723_v58, %v706_v22  ;;  %v740_v52 = vmul.f32 %v724_v26, %v706_v22  ;;  %v679_v58 = vadd.f32 %v671_v6, %v606_v60  ;;  %v868_v60 = vperm.slane %v2019_v41, 1 }
  0xf7   : > { %v749_v14 = vadd.f32 %v741_v47, %v676_v33  ;;  %v750_v12 = vadd.f32 %v742_v3, %v677_v37  ;;  %v819_v22 = vadd.f32 %v811_v45, %v746_v57  ;;  %v872_v59 = vperm.slane %v836_v13, 1 }
  0xf8   : > { %v747_v48 = vadd.f32 %v739_v50, %v674_v29  ;;  %v748_v2 = vadd.f32 %v740_v52, %v675_v31  ;;  %v752_v53 = vadd.f32 %v1995_v19, %v679_v58 }
  0xf9   : > { %v822_v33 = vadd.f32 %v814_v39, %v749_v14  ;;  %v823_v27 = vadd.f32 %v815_v61, %v750_v12 }
  0xfc   : > { %v779_v26 = vpop.permute.xlu1 %778 }
  0xfd   : > { %v812_v43 = vmul.f32 %v796_v30, %v779_v26  ;;  %v813_v54 = vmul.f32 %v797_v40, %v779_v26  ;;  %v793_v44 = vpop.permute.xlu0 %792 }
  0xfe   : > { %v816_v0 = vmul.f32 %v800_v17, %v793_v44  ;;  %v817_v11 = vmul.f32 %v801_v25, %v793_v44  ;;  %v818_v17 = vadd.f32 %v810_v10, %v745_v36  ;;  %v871_v25 = vperm.slane %v836_v13, 0 }
  0xff   : > { %v820_v16 = vadd.f32 %v812_v43, %v747_v48  ;;  %v821_v9 = vadd.f32 %v813_v54, %v748_v2 }
 0x100   : > { %v824_v32 = vadd.f32 %v816_v0, %v751_v23  ;;  %v825_v35 = vadd.f32 %v817_v11, %v752_v53 }
 0x101   : > { %v2036_v30 = vadd.f32 %v885_v42, %v820_v16  ;;  %v2038_v40 = vadd.f32 %v886_v24, %v821_v9 }
 0x103   : > { %v903_v37 = vrot.slane %v2036_v30, 6  ;;  %v904_v56 = vrot.slane %v2038_v40, 6  ;;  %v991_v34 = vrot.slane %v2036_v30, 4  ;;  %v992_v46 = vrot.slane %v2038_v40, 4 }
 0x104   : > { %v866_v28 = vpop.permute.xlu1 %865  ;;  %v1015_v10 = vrot.slane %v2036_v30, 2  ;;  %v1016_v45 = vrot.slane %v2038_v40, 2  ;;  %v1021_v6 = vrot.slane %v2036_v30, 3  ;;  %v1022_v63 = vrot.slane %v2038_v40, 3 }
 0x105   : > { %v889_v4 = vmul.f32 %v873_v62, %v866_v28  ;;  %v890_v20 = vmul.f32 %v874_v18, %v866_v28  ;;  %v845_v19 = vpop.permute.xlu0 %844  ;;  %v1063_v50 = vrot.slane %v2036_v30, 5  ;;  %v1064_v62 = vrot.slane %v2038_v40, 5 }
 0x106   : > { %v883_v41 = vmul.f32 %v867_v55, %v845_v19  ;;  %v884_v51 = vmul.f32 %v868_v60, %v845_v19  ;;  %v1151_v21 = vrot.slane %v2036_v30, 7  ;;  %v1152_v1 = vrot.slane %v2038_v40, 7 }
 0x107   : > { %v2050_v29 = vadd.f32 %v889_v4, %v824_v32  ;;  %v2052_v49 = vadd.f32 %v890_v20, %v825_v35 }
 0x108   : > { %v2056_v52 = vadd.f32 %v883_v41, %v818_v17  ;;  %v2058_v18 = vadd.f32 %v884_v51, %v819_v22 }
 0x109   : > { %v2064_v38 = vmax.f32 %v2036_v30, %v2050_v29  ;;  %v2068_v15 = vmax.f32 %v2038_v40, %v2052_v49  ;;  %v921_v47 = vrot.slane %v2050_v29, 5  ;;  %v922_v3 = vrot.slane %v2052_v49, 5 }
 0x10a   : > { %v913_v31 = vrot.slane %v2056_v52, 7  ;;  %v914_v8 = vrot.slane %v2058_v18, 7  ;;  %v939_v5 = vrot.slane %v2050_v29, 4  ;;  %v940_v13 = vrot.slane %v2052_v49, 4 }
 0x10b   : > { %v907_v42 = vmax.f32 %v2064_v38, %v903_v37  ;;  %v908_v24 = vmax.f32 %v2068_v15, %v904_v56  ;;  %v955_v7 = vrot.slane %v2050_v29, 1  ;;  %v956_v58 = vrot.slane %v2052_v49, 1 }
 0x10c   : > { %v917_v26 = vmax.f32 %v2056_v52, %v913_v31  ;;  %v918_v48 = vmax.f32 %v2058_v18, %v914_v8  ;;  %v943_v2 = vmax.f32 %v2050_v29, %v939_v5  ;;  %v944_v43 = vmax.f32 %v2052_v49, %v940_v13 }
 0x10d   : > { %v859_v54 = vpop.permute.xlu0 %858  ;;  %v909_v44 = vmax.f32 %v907_v42, %v2050_v29  ;;  %v910_v36 = vmax.f32 %v908_v24, %v2052_v49  ;;  %v959_v57 = vmax.f32 %v2036_v30, %v955_v7  ;;  %v960_v14 = vmax.f32 %v2038_v40, %v956_v58 }
 0x10e   : > { %v887_v12 = vmul.f32 %v871_v25, %v859_v54  ;;  %v888_v16 = vmul.f32 %v872_v59, %v859_v54  ;;  %v925_v9 = vmax.f32 %v917_v26, %v921_v47  ;;  %v926_v0 = vmax.f32 %v918_v48, %v922_v3 }
 0x10f   : > { %v967_v11 = vrot.slane %v2056_v52, 1  ;;  %v968_v39 = vrot.slane %v2058_v18, 1  ;;  %v1027_v61 = vrot.slane %v2050_v29, 2  ;;  %v1028_v55 = vrot.slane %v2052_v49, 2 }
 0x110   : > { %v2100_v60 = vadd.f32 %v887_v12, %v822_v33  ;;  %v2102_v23 = vadd.f32 %v888_v16, %v823_v27  ;;  %v927_v53 = vmax.f32 %v925_v9, %v903_v37  ;;  %v928_v17 = vmax.f32 %v926_v0, %v904_v56 }
 0x111   : > { %v983_v22 = vmax.f32 %v2036_v30, %v967_v11  ;;  %v984_v25 = vmax.f32 %v2038_v40, %v968_v39  ;;  %v997_v59 = vmax.f32 %v2050_v29, %v967_v11  ;;  %v998_v32 = vmax.f32 %v2052_v49, %v968_v39 }
 0x112   : > { %v931_v35 = vrot.slane %v927_v53, 5  ;;  %v932_v28 = vrot.slane %v928_v17, 5  ;;  %v947_v4 = vrot.slane %v2100_v60, 4  ;;  %v948_v20 = vrot.slane %v2102_v23, 4 }
 0x113   : > { %v961_v33 = vrot.slane %v2100_v60, 3  ;;  %v962_v27 = vrot.slane %v2102_v23, 3  ;;  %v985_v37 = vrot.slane %v2100_v60, 2  ;;  %v986_v56 = vrot.slane %v2102_v23, 2 }
 0x114   : > { %v935_v19 = vadd.f32 %v931_v35, %v909_v44  ;;  %v936_v41 = vadd.f32 %v932_v28, %v910_v36  ;;  %v951_v51 = vmax.f32 %v943_v2, %v947_v4  ;;  %v952_v31 = vmax.f32 %v944_v43, %v948_v20 }
 0x115   : > { %v965_v8 = vmax.f32 %v959_v57, %v961_v33  ;;  %v966_v5 = vmax.f32 %v960_v14, %v962_v27  ;;  %v989_v13 = vmax.f32 %v983_v22, %v985_v37  ;;  %v990_v42 = vmax.f32 %v984_v25, %v986_v56 }
 0x116   : > { %v2122_v24 = vmul.f32 0.5, %v935_v19  ;;  %v2124_v26 = vmul.f32 0.5, %v936_v41  ;;  %v953_v48 = vmax.f32 %v951_v51, %v2056_v52  ;;  %v954_v54 = vmax.f32 %v952_v31, %v2058_v18 }
 0x117   : > { %v971_v2 = vmax.f32 %v965_v8, %v967_v11  ;;  %v972_v44 = vmax.f32 %v966_v5, %v968_v39  ;;  %v995_v43 = vmax.f32 %v989_v13, %v991_v34  ;;  %v996_v36 = vmax.f32 %v990_v42, %v992_v46 }
 0x118   : > { %v999_v57 = vmax.f32 %v997_v59, %v2036_v30  ;;  %v1000_v14 = vmax.f32 %v998_v32, %v2038_v40  ;;  %v1013_v12 = vmax.f32 %v2050_v29, %v2100_v60  ;;  %v1014_v16 = vmax.f32 %v2052_v49, %v2102_v23 }
 0x119   : > { %v975_v9 = vrot.slane %v971_v2, 1  ;;  %v976_v0 = vrot.slane %v972_v44, 1  ;;  %v1033_v11 = vrot.slane %v2056_v52, 6  ;;  %v1034_v39 = vrot.slane %v2058_v18, 6 }
 0x11a   : > { %v1001_v53 = vmax.f32 %v999_v57, %v921_v47  ;;  %v1002_v17 = vmax.f32 %v1000_v14, %v922_v3  ;;  %v1019_v22 = vmax.f32 %v1013_v12, %v1015_v10  ;;  %v1020_v25 = vmax.f32 %v1014_v16, %v1016_v45 }
 0x11b   : > { %v979_v59 = vadd.f32 %v975_v9, %v953_v48  ;;  %v980_v32 = vadd.f32 %v976_v0, %v954_v54  ;;  %v1031_v35 = vmax.f32 %v1013_v12, %v1027_v61  ;;  %v1032_v28 = vmax.f32 %v1014_v16, %v1028_v55 }
 0x11c   : > { %v1005_v37 = vrot.slane %v1001_v53, 4  ;;  %v1006_v56 = vrot.slane %v1002_v17, 4  ;;  %v1025_v47 = vmax.f32 %v1019_v22, %v1021_v6  ;;  %v1026_v3 = vmax.f32 %v1020_v25, %v1022_v63 }
 0x11d   : > { %v2156_v10 = vmul.f32 0.5, %v979_v59  ;;  %v2158_v19 = vmul.f32 0.5, %v980_v32  ;;  %v1037_v45 = vmax.f32 %v1031_v35, %v1033_v11  ;;  %v1038_v41 = vmax.f32 %v1032_v28, %v1034_v39 }
 0x11e   : > { %v1009_v51 = vadd.f32 %v1005_v37, %v995_v43  ;;  %v1010_v31 = vadd.f32 %v1006_v56, %v996_v36  ;;  %v1049_v8 = vmax.f32 %v2036_v30, %v1033_v11  ;;  %v1050_v5 = vmax.f32 %v2038_v40, %v1034_v39 }
 0x11f   : > { %v1041_v13 = vrot.slane %v1037_v45, 3  ;;  %v1042_v42 = vrot.slane %v1038_v41, 3  ;;  %v1051_v48 = vrot.slane %v2100_v60, 1  ;;  %v1052_v54 = vrot.slane %v2102_v23, 1 }
 0x120   : > { %v2164_v2 = vmul.f32 0.5, %v1009_v51  ;;  %v2166_v44 = vmul.f32 0.5, %v1010_v31  ;;  %v1057_v57 = vrot.slane %v2100_v60, 5  ;;  %v1058_v14 = vrot.slane %v2102_v23, 5 }
 0x121   : > { %v1045_v43 = vadd.f32 %v1041_v13, %v1025_v47  ;;  %v1046_v36 = vadd.f32 %v1042_v42, %v1026_v3  ;;  %v1055_v12 = vmax.f32 %v1049_v8, %v1051_v48  ;;  %v1056_v16 = vmax.f32 %v1050_v5, %v1052_v54 }
 0x122   : > { %v1067_v9 = vmax.f32 %v2064_v38, %v1063_v50  ;;  %v1068_v0 = vmax.f32 %v2068_v15, %v1064_v62  ;;  %v1081_v11 = vmax.f32 %v2056_v52, %v947_v4  ;;  %v1082_v39 = vmax.f32 %v2058_v18, %v948_v20 }
 0x123   : > { %v2182_v53 = vmul.f32 0.5, %v1045_v43  ;;  %v2184_v17 = vmul.f32 0.5, %v1046_v36  ;;  %v1061_v22 = vmax.f32 %v1055_v12, %v1057_v57  ;;  %v1062_v25 = vmax.f32 %v1056_v16, %v1058_v14 }
 0x124   : > { %v1069_v50 = vmax.f32 %v1067_v9, %v955_v7  ;;  %v1070_v62 = vmax.f32 %v1068_v0, %v956_v58  ;;  %v1083_v38 = vmax.f32 %v1081_v11, %v961_v33  ;;  %v1084_v15 = vmax.f32 %v1082_v39, %v962_v27 }
 0x125   : > { %v1085_v4 = vrot.slane %v2100_v60, 6  ;;  %v1086_v20 = vrot.slane %v2102_v23, 6  ;;  %v1091_v59 = vrot.slane %v2056_v52, 5  ;;  %v1092_v32 = vrot.slane %v2058_v18, 5 }
 0x126   : > { %v1073_v35 = vrot.slane %v1069_v50, 1  ;;  %v1074_v28 = vrot.slane %v1070_v62, 1  ;;  %v1111_v7 = vrot.slane %v2050_v29, 7  ;;  %v1112_v58 = vrot.slane %v2052_v49, 7 }
 0x127   : > { %v1089_v37 = vmax.f32 %v1083_v38, %v1085_v4  ;;  %v1090_v56 = vmax.f32 %v1084_v15, %v1086_v20  ;;  %v1095_v33 = vmax.f32 %v2050_v29, %v1091_v59  ;;  %v1096_v27 = vmax.f32 %v2052_v49, %v1092_v32 }
 0x128   : > { %v1077_v47 = vadd.f32 %v1073_v35, %v1061_v22  ;;  %v1078_v3 = vadd.f32 %v1074_v28, %v1062_v25  ;;  %v1115_v45 = vmax.f32 %v2100_v60, %v1111_v7  ;;  %v1116_v41 = vmax.f32 %v2102_v23, %v1112_v58 }
 0x129   : > { %v1097_v51 = vmax.f32 %v1095_v33, %v2056_v52  ;;  %v1098_v31 = vmax.f32 %v1096_v27, %v2058_v18  ;;  %v1121_v13 = vmax.f32 %v2056_v52, %v1085_v4  ;;  %v1122_v42 = vmax.f32 %v2058_v18, %v1086_v20 }
 0x12a   : > { %v2208_v43 = vmul.f32 0.5, %v1077_v47  ;;  %v2210_v36 = vmul.f32 0.5, %v1078_v3  ;;  %v1117_v12 = vmax.f32 %v1115_v45, %v1091_v59  ;;  %v1118_v16 = vmax.f32 %v1116_v41, %v1092_v32 }
 0x12b   : > { %v1099_v9 = vmax.f32 %v1097_v51, %v1021_v6  ;;  %v1100_v0 = vmax.f32 %v1098_v31, %v1022_v63  ;;  %v1123_v11 = vmax.f32 %v1121_v13, %v1051_v48  ;;  %v1124_v39 = vmax.f32 %v1122_v42, %v1052_v54 }
 0x12c   : > { %v1119_v22 = vmax.f32 %v1117_v12, %v1085_v4  ;;  %v1120_v25 = vmax.f32 %v1118_v16, %v1086_v20  ;;  %v1125_v50 = vrot.slane %v2100_v60, 7  ;;  %v1126_v62 = vrot.slane %v2102_v23, 7 }
 0x12d   : > { %v1103_v38 = vrot.slane %v1099_v9, 4  ;;  %v1104_v15 = vrot.slane %v1100_v0, 4  ;;  %v1141_v59 = vmax.f32 %v1049_v8, %v1027_v61  ;;  %v1142_v32 = vmax.f32 %v1050_v5, %v1028_v55 }
 0x12e   : > { %v1129_v6 = vmax.f32 %v1123_v11, %v1125_v50  ;;  %v1130_v35 = vmax.f32 %v1124_v39, %v1126_v62  ;;  %v1143_v63 = vrot.slane %v2056_v52, 2  ;;  %v1144_v48 = vrot.slane %v2058_v18, 2 }
 0x12f   : > { %v1107_v54 = vadd.f32 %v1103_v38, %v1089_v37  ;;  %v1108_v4 = vadd.f32 %v1104_v15, %v1090_v56  ;;  %v1149_v60 = vmax.f32 %v2056_v52, %v1057_v57  ;;  %v1150_v23 = vmax.f32 %v2058_v18, %v1058_v14 }
 0x130   : > { %v1133_v20 = vrot.slane %v1129_v6, 3  ;;  %v1134_v28 = vrot.slane %v1130_v35, 3  ;;  %v1147_v29 = vmax.f32 %v1141_v59, %v1143_v63  ;;  %v1148_v61 = vmax.f32 %v1142_v32, %v1144_v48 }
 0x131   : > { %v1109_v8 = vmul.f32 0.5, %v1107_v54  ;;  %v1110_v49 = vmul.f32 0.5, %v1108_v4  ;;  %v1155_v55 = vmax.f32 %v1149_v60, %v1151_v21  ;;  %v1156_v5 = vmax.f32 %v1150_v23, %v1152_v1 }
 0x132   : > { %v1137_v7 = vadd.f32 %v1133_v20, %v1119_v22  ;;  %v1138_v58 = vadd.f32 %v1134_v28, %v1120_v25  ;;  %v1171_v52 = vrot.slane %v2122_v24, 5  ;;  %v1172_v18 = vrot.slane %v2124_v26, 5 }
 0x133   : > { %v1157_v57 = vmax.f32 %v1155_v55, %v991_v34  ;;  %v1158_v14 = vmax.f32 %v1156_v5, %v992_v46  ;;  %v1177_v37 = vrot.slane %v2156_v10, 1  ;;  %v1178_v56 = vrot.slane %v2158_v19, 1 }
 0x134   : > { %v1139_v21 = vmul.f32 0.5, %v1137_v7  ;;  %v1140_v33 = vmul.f32 0.5, %v1138_v58  ;;  %v1183_v1 = vrot.slane %v2182_v53, 4  ;;  %v1184_v27 = vrot.slane %v2184_v17, 4 }
 0x135   : > { %v1161_v24 = vrot.slane %v1157_v57, 7  ;;  %v1162_v26 = vrot.slane %v1158_v14, 7  ;;  %v1189_v30 = vrot.slane %v2208_v43, 3  ;;  %v1190_v34 = vrot.slane %v2210_v36, 3 }
 0x136   : > { %v1195_v40 = vrot.slane %v1139_v21, 3  ;;  %v1196_v46 = vrot.slane %v1140_v33, 3  ;;  %v1205_v10 = vsel %vm244_vm0, %v1171_v52, %v1177_v37  ;;  %v1206_v19 = vsel %vm244_vm0, %v1172_v18, %v1178_v56 }
 0x137   : > { %v1165_v47 = vadd.f32 %v1161_v24, %v1147_v29  ;;  %v1166_v3 = vadd.f32 %v1162_v26, %v1148_v61  ;;  %v1208_v53 = vsel %vm1207_vm4, %v1205_v10, %v2164_v2  ;;  %v1209_v17 = vsel %vm1207_vm4, %v1206_v19, %v2166_v44 }
 0x138   : > { %v1211_v51 = vsel %vm1210_vm5, %v1208_v53, %v1183_v1  ;;  %v1212_v31 = vsel %vm1210_vm5, %v1209_v17, %v1184_v27 }
 0x139   : > { %v1167_v45 = vmul.f32 0.5, %v1165_v47  ;;  %v1168_v41 = vmul.f32 0.5, %v1166_v3  ;;  %v1214_v13 = vsel %vm1213_vm6, %v1211_v51, %v1189_v30  ;;  %v1215_v42 = vsel %vm1213_vm6, %v1212_v31, %v1190_v34 }
 0x13a   : > { %v1217_v2 = vsel %vm1216_vm7, %v1214_v13, %v1109_v8  ;;  %v1218_v44 = vsel %vm1216_vm7, %v1215_v42, %v1110_v49 }
 0x13b   : > { %v1201_v43 = vrot.slane %v1167_v45, 2  ;;  %v1202_v36 = vrot.slane %v1168_v41, 2  ;;  %v1220_v12 = vsel %vm1219_vm8, %v1217_v2, %v1195_v40  ;;  %v1221_v16 = vsel %vm1219_vm8, %v1218_v44, %v1196_v46 }
 0x13d   : > { %v1223_v9 = vsel %vm1222_vm9, %v1220_v12, %v1201_v43  ;;  %v1224_v0 = vsel %vm1222_vm9, %v1221_v16, %v1202_v36 }
 0x13e   : > { %1225 = vst [vmem:[%s208_s8] sm:$0xff] %v1223_v9 }
 0x13f   : > { %1226 = vst [vmem:[%s208_s8 + $0x8] sm:$0xff] %v1224_v0 }
 0x140   : > { %1486 = shalt.err (!%p1483_p13)
}
 0x141   : > { %1364 = dma.vmem_to_hbm [thread:$0]  (%p1616_p9), %s1244_s9, 256, %s1246_s10, %s1228_s11  }
 0x142 PF: > { %s1257_s19 = sand.u32 1, %s1521_s12   ;;  %p1371_p0 = pnand %p1333_p12, %p1623_p11 }
 0x143   : > { %s1258_s24 = scalar_lea.sflag [#allocation4], %s1257_s19 }
 0x144   : > { %p1372_p1 = pneg %p1371_p0 }
 0x146   : > { %1516 = dma.done.wait (%p1372_p1), %s1258_s24, 256  }
 0x147   : > { %1518 = vsyncadd (%p1372_p1), %s1258_s24, 4294967040  ;;  %s19_s17 = sadd.s32 1, %s1541_s17   ;;  %s2315_s12 = smov %s1525_s13 }
 0x148   : > { %p16_p2 = scmp.ge.s32.totalorder %s19_s17, 4   ;;  %s2316_s13 = smov %s1529_s14 }
 0x149   : > { %s2317_s14 = smov %s1621_s26  ;;  %s2318_s15 = smov %s1537_s16 }
 0x14a   : > { %s2319_s16 = smov %s2321_s20  ;;  %18 = sbr.rel (!%p16_p2) target bundleno = 6 (0x6), region = 93 }
 0x14f   :  { %1264 = vsyncpa [#allocation3], 1 }
 0x150   :  { %1266 = vsyncpa [#allocation3 + $0x1], 1 }
 0x151   :  { %1267 = vsyncpa [#allocation4], 1 }
 0x152   :  { %1269 = vsyncpa [#allocation4 + $0x1], 1 }

</bundles_post_ra>
